<compile_context>
chip_gen: v6e
topology: v6e:2x2x1
jax: 0.10.0
libtpu: 0.0.40
codegen_flags: <defaults>
</compile_context>

<pallas_src>
import jax
import jax.numpy as jnp
from jax.experimental import pallas as pl
from jax.experimental.pallas import tpu as pltpu


# ----------------------------------------------------------------------------
# Fused kernel: embedding gather -> GRU -> attention -> classifier
# ----------------------------------------------------------------------------
def fused_kernel(qid_sref,                      # SMEM [S, B] int32 (scalar prefetch)
                 v_ref,                          # VMEM [Bb, K, V] f32
                 emb_ref,                        # VMEM [vocab, E] f32
                 wih_ref, whh_ref, bih_ref, bhh_ref,   # GRU params (w* bf16, b* f32)
                 wv_ref, wq_ref, wa_ref,         # attention params (wa as [1, Ha] f32)
                 wqc_ref, wvc_ref, wc_ref, bc_ref,     # classifier params
                 logits_ref, att_ref,            # outputs [Bb, C], [Bb, K]
                 x_scratch):                     # VMEM [S*Bb, E] f32 scratch
    Bb, K, Vd = v_ref.shape
    S = qid_sref.shape[0]
    H = whh_ref.shape[0]
    bi = pl.program_id(0)

    # ---- word embedding: row gather via SMEM scalar indices (time-major) ----
    # TODO(synk): for production vocab sizes keep the table in HBM
    # (BlockSpec(memory_space=pl.ANY)) and DMA only the needed rows.
    for t in range(S):
        for bcol in range(Bb):
            tok = qid_sref[t, bi * Bb + bcol]
            row = t * Bb + bcol
            x_scratch[row:row + 1, :] = emb_ref[pl.ds(tok, 1), :]
    x_flat = x_scratch[...]                                         # [S*Bb, E]

    # ---- GRU (PyTorch gate order r|z|n); input projection hoisted ----
    gi_all = jnp.dot(x_flat.astype(jnp.bfloat16), wih_ref[...],
                     preferred_element_type=jnp.float32) + bih_ref[...]  # [S*Bb, 3H]
    whh_bf = whh_ref[...]                                           # already bf16
    bhh_b = jnp.broadcast_to(bhh_ref[...], (Bb, 3 * H))             # hoisted bcast

    h = jnp.zeros((Bb, H), jnp.float32)
    for t in range(S):                                              # unrolled (S small)
        gi = gi_all[t * Bb:(t + 1) * Bb, :]                         # [Bb, 3H]
        gh = jnp.dot(h.astype(jnp.bfloat16), whh_bf,
                     preferred_element_type=jnp.float32) + bhh_b    # [Bb, 3H]
        r = jax.nn.sigmoid(gi[:, :H] + gh[:, :H])
        z = jax.nn.sigmoid(gi[:, H:2 * H] + gh[:, H:2 * H])
        n = jnp.tanh(gi[:, 2 * H:] + r * gh[:, 2 * H:])
        h = (1.0 - z) * n + z * h                                   # [Bb, H]

    # ---- top-down attention ----
    v3 = v_ref[...]                                                 # [Bb, K, V] f32
    v2_bf = v3.reshape(Bb * K, Vd).astype(jnp.bfloat16)
    h_bf = h.astype(jnp.bfloat16)

    v_proj = jax.nn.relu(jnp.dot(v2_bf, wv_ref[...],
                                 preferred_element_type=jnp.float32))
    v_proj = v_proj.reshape(Bb, K, -1)                              # [Bb, K, Ha]
    q_proj = jax.nn.relu(jnp.dot(h_bf, wq_ref[...],
                                 preferred_element_type=jnp.float32))  # [Bb, Ha]
    joint = v_proj * q_proj[:, None, :]                             # [Bb, K, Ha]

    # attention logits: VPU multiply + lane reduce (no degenerate N=1 MXU op)
    wa_b = wa_ref[...][None, :, :]                                  # [1, 1, Ha]
    s = jnp.sum(joint * wa_b, axis=-1)                              # [Bb, K]

    # softmax over objects K
    m = jnp.max(s, axis=-1, keepdims=True)
    e = jnp.exp(s - m)
    denom = jnp.sum(e, axis=-1, keepdims=True)
    att = e * pl.reciprocal(denom, approx=True)                     # [Bb, K]
    att_ref[...] = att                                              # lane-dense out

    # weighted visual sum: VPU multiply + sublane reduce (K is small)
    v_emb = jnp.sum(att[:, :, None] * v3, axis=1)                   # [Bb, V]

    # ---- classifier: (relu(q Wqc) * relu(v_emb Wvc)) Wc + bc ----
    q_repr = jax.nn.relu(jnp.dot(h_bf, wqc_ref[...],
                                 preferred_element_type=jnp.float32))
    v_repr = jax.nn.relu(jnp.dot(v_emb.astype(jnp.bfloat16), wvc_ref[...],
                                 preferred_element_type=jnp.float32))
    logits_ref[...] = jnp.dot((q_repr * v_repr).astype(jnp.bfloat16),
                              wc_ref[...],
                              preferred_element_type=jnp.float32) + bc_ref[...]


# ----------------------------------------------------------------------------
# Wrapper: single fused pallas_call with a batch grid
# ----------------------------------------------------------------------------
def base_model_forward(v, b, q, a, params):
    """Pallas equivalent of BaseModel.forward; `b`, `a` (and masks) are unused,
    matching the reference forward."""
    B, K, Vd = v.shape
    S = q.shape[1]
    E = params["emb_table"].shape[1]
    C = params["wc"].shape[1]

    block_b = B if B <= 128 else 128
    assert B % block_b == 0, "batch must tile evenly"
    grid = (B // block_b,)

    # time-major token ids so GRU timesteps are contiguous leading-axis slices
    q_t = q.T.astype(jnp.int32)                                     # [S, B]
    # attention-logit weight laid out lane-major for the VPU mul + reduce
    wa_row = params["wa"].reshape(1, -1)                            # [1, Ha]

    def bf16(x):
        return x.astype(jnp.bfloat16)

    # MXU weights pre-cast to bf16 (half the HBM->VMEM bytes, no in-kernel cast);
    # embedding table / biases / wa stay f32 for f32 VPU math.
    weights = [params["emb_table"],
               bf16(params["gru_wih"]), bf16(params["gru_whh"]),
               params["gru_bih"], params["gru_bhh"],
               bf16(params["wv"]), bf16(params["wq"]), wa_row,
               bf16(params["wqc"]), bf16(params["wvc"]), bf16(params["wc"]),
               params["bc"]]

    def full_spec(p):
        nd = p.ndim
        return pl.BlockSpec(p.shape, lambda i, *_, _nd=nd: (0,) * _nd)

    in_specs = [pl.BlockSpec((block_b, K, Vd), lambda i, *_: (i, 0, 0))]
    in_specs += [full_spec(w) for w in weights]

    grid_spec = pltpu.PrefetchScalarGridSpec(
        num_scalar_prefetch=1,
        grid=grid,
        in_specs=in_specs,
        out_specs=(pl.BlockSpec((block_b, C), lambda i, *_: (i, 0)),
                   pl.BlockSpec((block_b, K), lambda i, *_: (i, 0))),
        scratch_shapes=[pltpu.VMEM((S * block_b, E), jnp.float32)],
    )

    logits, att = pl.pallas_call(
        fused_kernel,
        out_shape=(jax.ShapeDtypeStruct((B, C), jnp.float32),
                   jax.ShapeDtypeStruct((B, K), jnp.float32)),
        grid_spec=grid_spec,
        compiler_params=pltpu.CompilerParams(
            dimension_semantics=("parallel",),      # megacore sharding on v7x
            vmem_limit_bytes=32 * 1024 * 1024),
    )(q_t, v, *weights)

    # lane-dense kernel output; expand to [B, K, 1] outside the kernel
    return logits, att[..., None]


# ----------------------------------------------------------------------------
# Pure-JAX f32 reference (same math, same parameterization)
# ----------------------------------------------------------------------------
def reference_forward(v, q, params):
    emb = params["emb_table"][q]                                    # [B, S, E]
    B, S, _ = emb.shape
    H = params["gru_whh"].shape[0]
    h = jnp.zeros((B, H), jnp.float32)
    for t in range(S):
        x = emb[:, t, :]
        gi = x @ params["gru_wih"] + params["gru_bih"]
        gh = h @ params["gru_whh"] + params["gru_bhh"]
        r = jax.nn.sigmoid(gi[:, :H] + gh[:, :H])
        z = jax.nn.sigmoid(gi[:, H:2 * H] + gh[:, H:2 * H])
        n = jnp.tanh(gi[:, 2 * H:] + r * gh[:, 2 * H:])
        h = (1.0 - z) * n + z * h
    v_proj = jax.nn.relu(v @ params["wv"])                          # [B, K, Ha]
    q_proj = jax.nn.relu(h @ params["wq"])                          # [B, Ha]
    s = jnp.sum(v_proj * q_proj[:, None, :] * params["wa"].reshape(1, 1, -1),
                axis=-1)                                            # [B, K]
    att = jax.nn.softmax(s, axis=-1)
    v_emb = jnp.sum(att[:, :, None] * v, axis=1)                    # [B, V]
    q_repr = jax.nn.relu(h @ params["wqc"])
    v_repr = jax.nn.relu(v_emb @ params["wvc"])
    logits = (q_repr * v_repr) @ params["wc"] + params["bc"]
    return logits, att[..., None]


# ----------------------------------------------------------------------------
# Deterministic parameter init + smoke test
# ----------------------------------------------------------------------------
def init_params(key, vocab, E, H, V, Ha, Hc, C):
    ks = jax.random.split(key, 10)

    def w(k, shape, scale=0.08):
        return (scale * jax.random.normal(k, shape)).astype(jnp.float32)

    # NOTE: gru_wih / gru_whh are the transposes of PyTorch's (3H, in) weights,
    # gate order r|z|n, n = tanh(i_n + r*h_n) (PyTorch GRU convention).
    return {
        "emb_table": w(ks[0], (vocab, E)),
        "gru_wih":   w(ks[1], (E, 3 * H)),
        "gru_whh":   w(ks[2], (H, 3 * H)),
        "gru_bih":   jnp.zeros((1, 3 * H), jnp.float32),
        "gru_bhh":   jnp.zeros((1, 3 * H), jnp.float32),
        "wv":        w(ks[3], (V, Ha)),
        "wq":        w(ks[4], (H, Ha)),
        "wa":        w(ks[5], (Ha, 1)),
        "wqc":       w(ks[6], (H, Hc)),
        "wvc":       w(ks[7], (V, Hc)),
        "wc":        w(ks[8], (Hc, C)),
        "bc":        jnp.zeros((1, C), jnp.float32),
    }


if __name__ == "__main__":
    # small shapes consistent with the forward signature
    B, K, Vdim, b_dim = 2, 8, 32, 4        # batch, num_objs, obj_dim, b_dim
    S, vocab, E, H = 8, 50, 32, 32         # seq_len, vocab, word-emb, q-hidden
    Ha, Hc, C = 32, 32, 10                 # att hidden, classifier hidden, classes

    key = jax.random.PRNGKey(0)
    k_v, k_b, k_q, k_a, k_p = jax.random.split(key, 5)

    v = jax.random.normal(k_v, (B, K, Vdim), dtype=jnp.float32)
    b = jax.random.normal(k_b, (B, K, b_dim), dtype=jnp.float32)   # unused (as in ref)
    q = jax.random.randint(k_q, (B, S), 0, vocab, dtype=jnp.int32)
    a = jax.random.normal(k_a, (B, C), dtype=jnp.float32)          # unused (as in ref)
    params = init_params(k_p, vocab, E, H, Vdim, Ha, Hc, C)

    logits, att = base_model_forward(v, b, q, a, params)
    jax.block_until_ready((logits, att))

    assert logits.shape == (B, C)
    assert att.shape == (B, K, 1)
    # attention weights sum to 1 over the object axis (approx reciprocal -> loose atol)
    assert bool(jnp.allclose(att.sum(axis=1), 1.0, atol=1e-2))

    # loose-tolerance check vs. a pure-f32 JAX reference (kernel uses bf16 MXU inputs)
    ref_logits, ref_att = reference_forward(v, q, params)
    assert bool(jnp.allclose(att, ref_att, atol=1e-2, rtol=5e-2))
    assert bool(jnp.allclose(logits, ref_logits, atol=1e-2, rtol=5e-2))
    print("KERNEL_OK")
</pallas_src>

<mosaic_0001>
module attributes {stable_mosaic.version = 11 : i64} {
  func.func @fused_kernel(%arg0: i32, %arg1: memref<8x2xi32, #tpu.memory_space<smem>>, %arg2: memref<2x8x32xf32, #tpu.memory_space<vmem>>, %arg3: memref<50x32xf32, #tpu.memory_space<vmem>>, %arg4: memref<32x96xbf16, #tpu.memory_space<vmem>>, %arg5: memref<32x96xbf16, #tpu.memory_space<vmem>>, %arg6: memref<1x96xf32, #tpu.memory_space<vmem>>, %arg7: memref<1x96xf32, #tpu.memory_space<vmem>>, %arg8: memref<32x32xbf16, #tpu.memory_space<vmem>>, %arg9: memref<32x32xbf16, #tpu.memory_space<vmem>>, %arg10: memref<1x32xf32, #tpu.memory_space<vmem>>, %arg11: memref<32x32xbf16, #tpu.memory_space<vmem>>, %arg12: memref<32x32xbf16, #tpu.memory_space<vmem>>, %arg13: memref<32x10xbf16, #tpu.memory_space<vmem>>, %arg14: memref<1x10xf32, #tpu.memory_space<vmem>>, %arg15: memref<2x10xf32, #tpu.memory_space<vmem>>, %arg16: memref<2x8xf32, #tpu.memory_space<vmem>>, %arg17: memref<16x32xf32, #tpu.memory_space<vmem>>) attributes {dimension_semantics = [#tpu.dimension_semantics<parallel>], iteration_bounds = array<i64: 1>, scalar_prefetch = 1 : i64, scratch_operands = 1 : i64, tpu.core_type = #tpu.core_type<tc>, window_params = [{transform_indices = @transform_0, window_bounds = array<i64: 2, 8, 32>}, {pipeline_mode = #tpu.pipeline_mode<synchronous>, transform_indices = @transform_1, window_bounds = array<i64: 50, 32>}, {pipeline_mode = #tpu.pipeline_mode<synchronous>, transform_indices = @transform_2, window_bounds = array<i64: 32, 96>}, {pipeline_mode = #tpu.pipeline_mode<synchronous>, transform_indices = @transform_3, window_bounds = array<i64: 32, 96>}, {pipeline_mode = #tpu.pipeline_mode<synchronous>, transform_indices = @transform_4, window_bounds = array<i64: 1, 96>}, {pipeline_mode = #tpu.pipeline_mode<synchronous>, transform_indices = @transform_5, window_bounds = array<i64: 1, 96>}, {pipeline_mode = #tpu.pipeline_mode<synchronous>, transform_indices = @transform_6, window_bounds = array<i64: 32, 32>}, {pipeline_mode = #tpu.pipeline_mode<synchronous>, transform_indices = @transform_7, window_bounds = array<i64: 32, 32>}, {pipeline_mode = #tpu.pipeline_mode<synchronous>, transform_indices = @transform_8, window_bounds = array<i64: 1, 32>}, {pipeline_mode = #tpu.pipeline_mode<synchronous>, transform_indices = @transform_9, window_bounds = array<i64: 32, 32>}, {pipeline_mode = #tpu.pipeline_mode<synchronous>, transform_indices = @transform_10, window_bounds = array<i64: 32, 32>}, {pipeline_mode = #tpu.pipeline_mode<synchronous>, transform_indices = @transform_11, window_bounds = array<i64: 32, 10>}, {pipeline_mode = #tpu.pipeline_mode<synchronous>, transform_indices = @transform_12, window_bounds = array<i64: 1, 10>}, {transform_indices = @transform_13, window_bounds = array<i64: 2, 10>}, {transform_indices = @transform_14, window_bounds = array<i64: 2, 8>}]} {
    %c2_i32 = arith.constant 2 : i32
    %0 = arith.muli %arg0, %c2_i32 : i32
    %c0_i32 = arith.constant 0 : i32
    %1 = arith.addi %0, %c0_i32 : i32
    %c0 = arith.constant 0 : index
    %2 = arith.index_cast %1 : i32 to index
    %3 = memref.load %arg1[%c0, %2] : memref<8x2xi32, #tpu.memory_space<smem>>
    %4 = arith.index_cast %3 : i32 to index
    %c0_0 = arith.constant 0 : index
    %5 = vector.load %arg3[%4, %c0_0] : memref<50x32xf32, #tpu.memory_space<vmem>>, vector<1x32xf32>
    %c0_1 = arith.constant 0 : index
    %c0_2 = arith.constant 0 : index
    %6 = vector.load %arg17[%c0_1, %c0_2] : memref<16x32xf32, #tpu.memory_space<vmem>>, vector<1x32xf32>
    tpu.vector_store %arg17[%c0_1, %c0_2], %5 {strides = array<i32>} : memref<16x32xf32, #tpu.memory_space<vmem>>, vector<1x32xf32>,
    %c2_i32_3 = arith.constant 2 : i32
    %7 = arith.muli %arg0, %c2_i32_3 : i32
    %c1_i32 = arith.constant 1 : i32
    %8 = arith.addi %7, %c1_i32 : i32
    %c0_4 = arith.constant 0 : index
    %9 = arith.index_cast %8 : i32 to index
    %10 = memref.load %arg1[%c0_4, %9] : memref<8x2xi32, #tpu.memory_space<smem>>
    %11 = arith.index_cast %10 : i32 to index
    %c0_5 = arith.constant 0 : index
    %12 = vector.load %arg3[%11, %c0_5] : memref<50x32xf32, #tpu.memory_space<vmem>>, vector<1x32xf32>
    %c1 = arith.constant 1 : index
    %c0_6 = arith.constant 0 : index
    %13 = vector.load %arg17[%c1, %c0_6] : memref<16x32xf32, #tpu.memory_space<vmem>>, vector<1x32xf32>
    tpu.vector_store %arg17[%c1, %c0_6], %12 {strides = array<i32>} : memref<16x32xf32, #tpu.memory_space<vmem>>, vector<1x32xf32>,
    %c2_i32_7 = arith.constant 2 : i32
    %14 = arith.muli %arg0, %c2_i32_7 : i32
    %c0_i32_8 = arith.constant 0 : i32
    %15 = arith.addi %14, %c0_i32_8 : i32
    %c1_9 = arith.constant 1 : index
    %16 = arith.index_cast %15 : i32 to index
    %17 = memref.load %arg1[%c1_9, %16] : memref<8x2xi32, #tpu.memory_space<smem>>
    %18 = arith.index_cast %17 : i32 to index
    %c0_10 = arith.constant 0 : index
    %19 = vector.load %arg3[%18, %c0_10] : memref<50x32xf32, #tpu.memory_space<vmem>>, vector<1x32xf32>
    %c2 = arith.constant 2 : index
    %c0_11 = arith.constant 0 : index
    %20 = vector.load %arg17[%c2, %c0_11] : memref<16x32xf32, #tpu.memory_space<vmem>>, vector<1x32xf32>
    tpu.vector_store %arg17[%c2, %c0_11], %19 {strides = array<i32>} : memref<16x32xf32, #tpu.memory_space<vmem>>, vector<1x32xf32>,
    %c2_i32_12 = arith.constant 2 : i32
    %21 = arith.muli %arg0, %c2_i32_12 : i32
    %c1_i32_13 = arith.constant 1 : i32
    %22 = arith.addi %21, %c1_i32_13 : i32
    %c1_14 = arith.constant 1 : index
    %23 = arith.index_cast %22 : i32 to index
    %24 = memref.load %arg1[%c1_14, %23] : memref<8x2xi32, #tpu.memory_space<smem>>
    %25 = arith.index_cast %24 : i32 to index
    %c0_15 = arith.constant 0 : index
    %26 = vector.load %arg3[%25, %c0_15] : memref<50x32xf32, #tpu.memory_space<vmem>>, vector<1x32xf32>
    %c3 = arith.constant 3 : index
    %c0_16 = arith.constant 0 : index
    %27 = vector.load %arg17[%c3, %c0_16] : memref<16x32xf32, #tpu.memory_space<vmem>>, vector<1x32xf32>
    tpu.vector_store %arg17[%c3, %c0_16], %26 {strides = array<i32>} : memref<16x32xf32, #tpu.memory_space<vmem>>, vector<1x32xf32>,
    %c2_i32_17 = arith.constant 2 : i32
    %28 = arith.muli %arg0, %c2_i32_17 : i32
    %c0_i32_18 = arith.constant 0 : i32
    %29 = arith.addi %28, %c0_i32_18 : i32
    %c2_19 = arith.constant 2 : index
    %30 = arith.index_cast %29 : i32 to index
    %31 = memref.load %arg1[%c2_19, %30] : memref<8x2xi32, #tpu.memory_space<smem>>
    %32 = arith.index_cast %31 : i32 to index
    %c0_20 = arith.constant 0 : index
    %33 = vector.load %arg3[%32, %c0_20] : memref<50x32xf32, #tpu.memory_space<vmem>>, vector<1x32xf32>
    %c4 = arith.constant 4 : index
    %c0_21 = arith.constant 0 : index
    %34 = vector.load %arg17[%c4, %c0_21] : memref<16x32xf32, #tpu.memory_space<vmem>>, vector<1x32xf32>
    tpu.vector_store %arg17[%c4, %c0_21], %33 {strides = array<i32>} : memref<16x32xf32, #tpu.memory_space<vmem>>, vector<1x32xf32>,
    %c2_i32_22 = arith.constant 2 : i32
    %35 = arith.muli %arg0, %c2_i32_22 : i32
    %c1_i32_23 = arith.constant 1 : i32
    %36 = arith.addi %35, %c1_i32_23 : i32
    %c2_24 = arith.constant 2 : index
    %37 = arith.index_cast %36 : i32 to index
    %38 = memref.load %arg1[%c2_24, %37] : memref<8x2xi32, #tpu.memory_space<smem>>
    %39 = arith.index_cast %38 : i32 to index
    %c0_25 = arith.constant 0 : index
    %40 = vector.load %arg3[%39, %c0_25] : memref<50x32xf32, #tpu.memory_space<vmem>>, vector<1x32xf32>
    %c5 = arith.constant 5 : index
    %c0_26 = arith.constant 0 : index
    %41 = vector.load %arg17[%c5, %c0_26] : memref<16x32xf32, #tpu.memory_space<vmem>>, vector<1x32xf32>
    tpu.vector_store %arg17[%c5, %c0_26], %40 {strides = array<i32>} : memref<16x32xf32, #tpu.memory_space<vmem>>, vector<1x32xf32>,
    %c2_i32_27 = arith.constant 2 : i32
    %42 = arith.muli %arg0, %c2_i32_27 : i32
    %c0_i32_28 = arith.constant 0 : i32
    %43 = arith.addi %42, %c0_i32_28 : i32
    %c3_29 = arith.constant 3 : index
    %44 = arith.index_cast %43 : i32 to index
    %45 = memref.load %arg1[%c3_29, %44] : memref<8x2xi32, #tpu.memory_space<smem>>
    %46 = arith.index_cast %45 : i32 to index
    %c0_30 = arith.constant 0 : index
    %47 = vector.load %arg3[%46, %c0_30] : memref<50x32xf32, #tpu.memory_space<vmem>>, vector<1x32xf32>
    %c6 = arith.constant 6 : index
    %c0_31 = arith.constant 0 : index
    %48 = vector.load %arg17[%c6, %c0_31] : memref<16x32xf32, #tpu.memory_space<vmem>>, vector<1x32xf32>
    tpu.vector_store %arg17[%c6, %c0_31], %47 {strides = array<i32>} : memref<16x32xf32, #tpu.memory_space<vmem>>, vector<1x32xf32>,
    %c2_i32_32 = arith.constant 2 : i32
    %49 = arith.muli %arg0, %c2_i32_32 : i32
    %c1_i32_33 = arith.constant 1 : i32
    %50 = arith.addi %49, %c1_i32_33 : i32
    %c3_34 = arith.constant 3 : index
    %51 = arith.index_cast %50 : i32 to index
    %52 = memref.load %arg1[%c3_34, %51] : memref<8x2xi32, #tpu.memory_space<smem>>
    %53 = arith.index_cast %52 : i32 to index
    %c0_35 = arith.constant 0 : index
    %54 = vector.load %arg3[%53, %c0_35] : memref<50x32xf32, #tpu.memory_space<vmem>>, vector<1x32xf32>
    %c7 = arith.constant 7 : index
    %c0_36 = arith.constant 0 : index
    %55 = vector.load %arg17[%c7, %c0_36] : memref<16x32xf32, #tpu.memory_space<vmem>>, vector<1x32xf32>
    tpu.vector_store %arg17[%c7, %c0_36], %54 {strides = array<i32>} : memref<16x32xf32, #tpu.memory_space<vmem>>, vector<1x32xf32>,
    %c2_i32_37 = arith.constant 2 : i32
    %56 = arith.muli %arg0, %c2_i32_37 : i32
    %c0_i32_38 = arith.constant 0 : i32
    %57 = arith.addi %56, %c0_i32_38 : i32
    %c4_39 = arith.constant 4 : index
    %58 = arith.index_cast %57 : i32 to index
    %59 = memref.load %arg1[%c4_39, %58] : memref<8x2xi32, #tpu.memory_space<smem>>
    %60 = arith.index_cast %59 : i32 to index
    %c0_40 = arith.constant 0 : index
    %61 = vector.load %arg3[%60, %c0_40] : memref<50x32xf32, #tpu.memory_space<vmem>>, vector<1x32xf32>
    %c8 = arith.constant 8 : index
    %c0_41 = arith.constant 0 : index
    %62 = vector.load %arg17[%c8, %c0_41] : memref<16x32xf32, #tpu.memory_space<vmem>>, vector<1x32xf32>
    tpu.vector_store %arg17[%c8, %c0_41], %61 {strides = array<i32>} : memref<16x32xf32, #tpu.memory_space<vmem>>, vector<1x32xf32>,
    %c2_i32_42 = arith.constant 2 : i32
    %63 = arith.muli %arg0, %c2_i32_42 : i32
    %c1_i32_43 = arith.constant 1 : i32
    %64 = arith.addi %63, %c1_i32_43 : i32
    %c4_44 = arith.constant 4 : index
    %65 = arith.index_cast %64 : i32 to index
    %66 = memref.load %arg1[%c4_44, %65] : memref<8x2xi32, #tpu.memory_space<smem>>
    %67 = arith.index_cast %66 : i32 to index
    %c0_45 = arith.constant 0 : index
    %68 = vector.load %arg3[%67, %c0_45] : memref<50x32xf32, #tpu.memory_space<vmem>>, vector<1x32xf32>
    %c9 = arith.constant 9 : index
    %c0_46 = arith.constant 0 : index
    %69 = vector.load %arg17[%c9, %c0_46] : memref<16x32xf32, #tpu.memory_space<vmem>>, vector<1x32xf32>
    tpu.vector_store %arg17[%c9, %c0_46], %68 {strides = array<i32>} : memref<16x32xf32, #tpu.memory_space<vmem>>, vector<1x32xf32>,
    %c2_i32_47 = arith.constant 2 : i32
    %70 = arith.muli %arg0, %c2_i32_47 : i32
    %c0_i32_48 = arith.constant 0 : i32
    %71 = arith.addi %70, %c0_i32_48 : i32
    %c5_49 = arith.constant 5 : index
    %72 = arith.index_cast %71 : i32 to index
    %73 = memref.load %arg1[%c5_49, %72] : memref<8x2xi32, #tpu.memory_space<smem>>
    %74 = arith.index_cast %73 : i32 to index
    %c0_50 = arith.constant 0 : index
    %75 = vector.load %arg3[%74, %c0_50] : memref<50x32xf32, #tpu.memory_space<vmem>>, vector<1x32xf32>
    %c10 = arith.constant 10 : index
    %c0_51 = arith.constant 0 : index
    %76 = vector.load %arg17[%c10, %c0_51] : memref<16x32xf32, #tpu.memory_space<vmem>>, vector<1x32xf32>
    tpu.vector_store %arg17[%c10, %c0_51], %75 {strides = array<i32>} : memref<16x32xf32, #tpu.memory_space<vmem>>, vector<1x32xf32>,
    %c2_i32_52 = arith.constant 2 : i32
    %77 = arith.muli %arg0, %c2_i32_52 : i32
    %c1_i32_53 = arith.constant 1 : i32
    %78 = arith.addi %77, %c1_i32_53 : i32
    %c5_54 = arith.constant 5 : index
    %79 = arith.index_cast %78 : i32 to index
    %80 = memref.load %arg1[%c5_54, %79] : memref<8x2xi32, #tpu.memory_space<smem>>
    %81 = arith.index_cast %80 : i32 to index
    %c0_55 = arith.constant 0 : index
    %82 = vector.load %arg3[%81, %c0_55] : memref<50x32xf32, #tpu.memory_space<vmem>>, vector<1x32xf32>
    %c11 = arith.constant 11 : index
    %c0_56 = arith.constant 0 : index
    %83 = vector.load %arg17[%c11, %c0_56] : memref<16x32xf32, #tpu.memory_space<vmem>>, vector<1x32xf32>
    tpu.vector_store %arg17[%c11, %c0_56], %82 {strides = array<i32>} : memref<16x32xf32, #tpu.memory_space<vmem>>, vector<1x32xf32>,
    %c2_i32_57 = arith.constant 2 : i32
    %84 = arith.muli %arg0, %c2_i32_57 : i32
    %c0_i32_58 = arith.constant 0 : i32
    %85 = arith.addi %84, %c0_i32_58 : i32
    %c6_59 = arith.constant 6 : index
    %86 = arith.index_cast %85 : i32 to index
    %87 = memref.load %arg1[%c6_59, %86] : memref<8x2xi32, #tpu.memory_space<smem>>
    %88 = arith.index_cast %87 : i32 to index
    %c0_60 = arith.constant 0 : index
    %89 = vector.load %arg3[%88, %c0_60] : memref<50x32xf32, #tpu.memory_space<vmem>>, vector<1x32xf32>
    %c12 = arith.constant 12 : index
    %c0_61 = arith.constant 0 : index
    %90 = vector.load %arg17[%c12, %c0_61] : memref<16x32xf32, #tpu.memory_space<vmem>>, vector<1x32xf32>
    tpu.vector_store %arg17[%c12, %c0_61], %89 {strides = array<i32>} : memref<16x32xf32, #tpu.memory_space<vmem>>, vector<1x32xf32>,
    %c2_i32_62 = arith.constant 2 : i32
    %91 = arith.muli %arg0, %c2_i32_62 : i32
    %c1_i32_63 = arith.constant 1 : i32
    %92 = arith.addi %91, %c1_i32_63 : i32
    %c6_64 = arith.constant 6 : index
    %93 = arith.index_cast %92 : i32 to index
    %94 = memref.load %arg1[%c6_64, %93] : memref<8x2xi32, #tpu.memory_space<smem>>
    %95 = arith.index_cast %94 : i32 to index
    %c0_65 = arith.constant 0 : index
    %96 = vector.load %arg3[%95, %c0_65] : memref<50x32xf32, #tpu.memory_space<vmem>>, vector<1x32xf32>
    %c13 = arith.constant 13 : index
    %c0_66 = arith.constant 0 : index
    %97 = vector.load %arg17[%c13, %c0_66] : memref<16x32xf32, #tpu.memory_space<vmem>>, vector<1x32xf32>
    tpu.vector_store %arg17[%c13, %c0_66], %96 {strides = array<i32>} : memref<16x32xf32, #tpu.memory_space<vmem>>, vector<1x32xf32>,
    %c2_i32_67 = arith.constant 2 : i32
    %98 = arith.muli %arg0, %c2_i32_67 : i32
    %c0_i32_68 = arith.constant 0 : i32
    %99 = arith.addi %98, %c0_i32_68 : i32
    %c7_69 = arith.constant 7 : index
    %100 = arith.index_cast %99 : i32 to index
    %101 = memref.load %arg1[%c7_69, %100] : memref<8x2xi32, #tpu.memory_space<smem>>
    %102 = arith.index_cast %101 : i32 to index
    %c0_70 = arith.constant 0 : index
    %103 = vector.load %arg3[%102, %c0_70] : memref<50x32xf32, #tpu.memory_space<vmem>>, vector<1x32xf32>
    %c14 = arith.constant 14 : index
    %c0_71 = arith.constant 0 : index
    %104 = vector.load %arg17[%c14, %c0_71] : memref<16x32xf32, #tpu.memory_space<vmem>>, vector<1x32xf32>
    tpu.vector_store %arg17[%c14, %c0_71], %103 {strides = array<i32>} : memref<16x32xf32, #tpu.memory_space<vmem>>, vector<1x32xf32>,
    %c2_i32_72 = arith.constant 2 : i32
    %105 = arith.muli %arg0, %c2_i32_72 : i32
    %c1_i32_73 = arith.constant 1 : i32
    %106 = arith.addi %105, %c1_i32_73 : i32
    %c7_74 = arith.constant 7 : index
    %107 = arith.index_cast %106 : i32 to index
    %108 = memref.load %arg1[%c7_74, %107] : memref<8x2xi32, #tpu.memory_space<smem>>
    %109 = arith.index_cast %108 : i32 to index
    %c0_75 = arith.constant 0 : index
    %110 = vector.load %arg3[%109, %c0_75] : memref<50x32xf32, #tpu.memory_space<vmem>>, vector<1x32xf32>
    %c15 = arith.constant 15 : index
    %c0_76 = arith.constant 0 : index
    %111 = vector.load %arg17[%c15, %c0_76] : memref<16x32xf32, #tpu.memory_space<vmem>>, vector<1x32xf32>
    tpu.vector_store %arg17[%c15, %c0_76], %110 {strides = array<i32>} : memref<16x32xf32, #tpu.memory_space<vmem>>, vector<1x32xf32>,
    %c0_77 = arith.constant 0 : index
    %c0_78 = arith.constant 0 : index
    %112 = vector.load %arg17[%c0_77, %c0_78] : memref<16x32xf32, #tpu.memory_space<vmem>>, vector<16x32xf32>
    %113 = arith.truncf %112 : vector<16x32xf32> to vector<16x32xbf16>
    %c0_79 = arith.constant 0 : index
    %c0_80 = arith.constant 0 : index
    %114 = vector.load %arg4[%c0_79, %c0_80] : memref<32x96xbf16, #tpu.memory_space<vmem>>, vector<32x96xbf16>
    %cst = arith.constant dense<0.000000e+00> : vector<16x96xf32>
    %115 = tpu.matmul %113, %114, %cst {dimension_numbers = #tpu.dot_dimension_numbers<[1], [0], [0], [1], [0, 0, 1, 1], [], []>} : vector<16x32xbf16>, vector<32x96xbf16>, vector<16x96xf32> -> vector<16x96xf32>
    %c0_81 = arith.constant 0 : index
    %c0_82 = arith.constant 0 : index
    %116 = vector.load %arg6[%c0_81, %c0_82] : memref<1x96xf32, #tpu.memory_space<vmem>>, vector<1x96xf32>
    %117 = vector.broadcast %116 : vector<1x96xf32> to vector<16x96xf32>
    %118 = arith.addf %115, %117 : vector<16x96xf32>
    %c0_83 = arith.constant 0 : index
    %c0_84 = arith.constant 0 : index
    %119 = vector.load %arg5[%c0_83, %c0_84] : memref<32x96xbf16, #tpu.memory_space<vmem>>, vector<32x96xbf16>
    %c0_85 = arith.constant 0 : index
    %c0_86 = arith.constant 0 : index
    %120 = vector.load %arg7[%c0_85, %c0_86] : memref<1x96xf32, #tpu.memory_space<vmem>>, vector<1x96xf32>
    %121 = vector.shape_cast %120 : vector<1x96xf32> to vector<1x96xf32>
    %122 = vector.broadcast %121 : vector<1x96xf32> to vector<2x96xf32>
    %cst_87 = arith.constant 0.000000e+00 : f32
    %123 = vector.broadcast %cst_87 : f32 to vector<2x32xf32>
    %124 = vector.extract_strided_slice %118 {offsets = [0, 0], sizes = [2, 96], strides = [1, 1]} : vector<16x96xf32> to vector<2x96xf32>
    %125 = arith.truncf %123 : vector<2x32xf32> to vector<2x32xbf16>
    %cst_88 = arith.constant dense<0.000000e+00> : vector<2x96xf32>
    %126 = tpu.matmul %125, %119, %cst_88 {dimension_numbers = #tpu.dot_dimension_numbers<[1], [0], [0], [1], [0, 0, 1, 1], [], []>} : vector<2x32xbf16>, vector<32x96xbf16>, vector<2x96xf32> -> vector<2x96xf32>
    %127 = arith.addf %126, %122 : vector<2x96xf32>
    %128 = vector.extract_strided_slice %124 {offsets = [0, 0], sizes = [2, 32], strides = [1, 1]} : vector<2x96xf32> to vector<2x32xf32>
    %129 = vector.extract_strided_slice %127 {offsets = [0, 0], sizes = [2, 32], strides = [1, 1]} : vector<2x96xf32> to vector<2x32xf32>
    %130 = arith.addf %128, %129 : vector<2x32xf32>
    %131 = arith.negf %130 : vector<2x32xf32>
    %132 = math.exp %131 : vector<2x32xf32>
    %cst_89 = arith.constant 1.000000e+00 : f32
    %133 = vector.broadcast %cst_89 : f32 to vector<2x32xf32>
    %134 = arith.addf %133, %132 : vector<2x32xf32>
    %135 = arith.divf %133, %134 : vector<2x32xf32>
    %136 = vector.extract_strided_slice %124 {offsets = [0, 32], sizes = [2, 32], strides = [1, 1]} : vector<2x96xf32> to vector<2x32xf32>
    %137 = vector.extract_strided_slice %127 {offsets = [0, 32], sizes = [2, 32], strides = [1, 1]} : vector<2x96xf32> to vector<2x32xf32>
    %138 = arith.addf %136, %137 : vector<2x32xf32>
    %139 = arith.negf %138 : vector<2x32xf32>
    %140 = math.exp %139 : vector<2x32xf32>
    %cst_90 = arith.constant 1.000000e+00 : f32
    %141 = vector.broadcast %cst_90 : f32 to vector<2x32xf32>
    %142 = arith.addf %141, %140 : vector<2x32xf32>
    %143 = arith.divf %141, %142 : vector<2x32xf32>
    %144 = vector.extract_strided_slice %124 {offsets = [0, 64], sizes = [2, 32], strides = [1, 1]} : vector<2x96xf32> to vector<2x32xf32>
    %145 = vector.extract_strided_slice %127 {offsets = [0, 64], sizes = [2, 32], strides = [1, 1]} : vector<2x96xf32> to vector<2x32xf32>
    %146 = arith.mulf %135, %145 : vector<2x32xf32>
    %147 = arith.addf %144, %146 : vector<2x32xf32>
    %148 = math.tanh %147 : vector<2x32xf32>
    %cst_91 = arith.constant 1.000000e+00 : f32
    %149 = vector.broadcast %cst_91 : f32 to vector<2x32xf32>
    %150 = arith.subf %149, %143 : vector<2x32xf32>
    %151 = arith.mulf %150, %148 : vector<2x32xf32>
    %152 = arith.mulf %143, %123 : vector<2x32xf32>
    %153 = arith.addf %151, %152 : vector<2x32xf32>
    %154 = vector.extract_strided_slice %118 {offsets = [2, 0], sizes = [2, 96], strides = [1, 1]} : vector<16x96xf32> to vector<2x96xf32>
    %155 = arith.truncf %153 : vector<2x32xf32> to vector<2x32xbf16>
    %cst_92 = arith.constant dense<0.000000e+00> : vector<2x96xf32>
    %156 = tpu.matmul %155, %119, %cst_92 {dimension_numbers = #tpu.dot_dimension_numbers<[1], [0], [0], [1], [0, 0, 1, 1], [], []>} : vector<2x32xbf16>, vector<32x96xbf16>, vector<2x96xf32> -> vector<2x96xf32>
    %157 = arith.addf %156, %122 : vector<2x96xf32>
    %158 = vector.extract_strided_slice %154 {offsets = [0, 0], sizes = [2, 32], strides = [1, 1]} : vector<2x96xf32> to vector<2x32xf32>
    %159 = vector.extract_strided_slice %157 {offsets = [0, 0], sizes = [2, 32], strides = [1, 1]} : vector<2x96xf32> to vector<2x32xf32>
    %160 = arith.addf %158, %159 : vector<2x32xf32>
    %161 = arith.negf %160 : vector<2x32xf32>
    %162 = math.exp %161 : vector<2x32xf32>
    %cst_93 = arith.constant 1.000000e+00 : f32
    %163 = vector.broadcast %cst_93 : f32 to vector<2x32xf32>
    %164 = arith.addf %163, %162 : vector<2x32xf32>
    %165 = arith.divf %163, %164 : vector<2x32xf32>
    %166 = vector.extract_strided_slice %154 {offsets = [0, 32], sizes = [2, 32], strides = [1, 1]} : vector<2x96xf32> to vector<2x32xf32>
    %167 = vector.extract_strided_slice %157 {offsets = [0, 32], sizes = [2, 32], strides = [1, 1]} : vector<2x96xf32> to vector<2x32xf32>
    %168 = arith.addf %166, %167 : vector<2x32xf32>
    %169 = arith.negf %168 : vector<2x32xf32>
    %170 = math.exp %169 : vector<2x32xf32>
    %cst_94 = arith.constant 1.000000e+00 : f32
    %171 = vector.broadcast %cst_94 : f32 to vector<2x32xf32>
    %172 = arith.addf %171, %170 : vector<2x32xf32>
    %173 = arith.divf %171, %172 : vector<2x32xf32>
    %174 = vector.extract_strided_slice %154 {offsets = [0, 64], sizes = [2, 32], strides = [1, 1]} : vector<2x96xf32> to vector<2x32xf32>
    %175 = vector.extract_strided_slice %157 {offsets = [0, 64], sizes = [2, 32], strides = [1, 1]} : vector<2x96xf32> to vector<2x32xf32>
    %176 = arith.mulf %165, %175 : vector<2x32xf32>
    %177 = arith.addf %174, %176 : vector<2x32xf32>
    %178 = math.tanh %177 : vector<2x32xf32>
    %cst_95 = arith.constant 1.000000e+00 : f32
    %179 = vector.broadcast %cst_95 : f32 to vector<2x32xf32>
    %180 = arith.subf %179, %173 : vector<2x32xf32>
    %181 = arith.mulf %180, %178 : vector<2x32xf32>
    %182 = arith.mulf %173, %153 : vector<2x32xf32>
    %183 = arith.addf %181, %182 : vector<2x32xf32>
    %184 = vector.extract_strided_slice %118 {offsets = [4, 0], sizes = [2, 96], strides = [1, 1]} : vector<16x96xf32> to vector<2x96xf32>
    %185 = arith.truncf %183 : vector<2x32xf32> to vector<2x32xbf16>
    %cst_96 = arith.constant dense<0.000000e+00> : vector<2x96xf32>
    %186 = tpu.matmul %185, %119, %cst_96 {dimension_numbers = #tpu.dot_dimension_numbers<[1], [0], [0], [1], [0, 0, 1, 1], [], []>} : vector<2x32xbf16>, vector<32x96xbf16>, vector<2x96xf32> -> vector<2x96xf32>
    %187 = arith.addf %186, %122 : vector<2x96xf32>
    %188 = vector.extract_strided_slice %184 {offsets = [0, 0], sizes = [2, 32], strides = [1, 1]} : vector<2x96xf32> to vector<2x32xf32>
    %189 = vector.extract_strided_slice %187 {offsets = [0, 0], sizes = [2, 32], strides = [1, 1]} : vector<2x96xf32> to vector<2x32xf32>
    %190 = arith.addf %188, %189 : vector<2x32xf32>
    %191 = arith.negf %190 : vector<2x32xf32>
    %192 = math.exp %191 : vector<2x32xf32>
    %cst_97 = arith.constant 1.000000e+00 : f32
    %193 = vector.broadcast %cst_97 : f32 to vector<2x32xf32>
    %194 = arith.addf %193, %192 : vector<2x32xf32>
    %195 = arith.divf %193, %194 : vector<2x32xf32>
    %196 = vector.extract_strided_slice %184 {offsets = [0, 32], sizes = [2, 32], strides = [1, 1]} : vector<2x96xf32> to vector<2x32xf32>
    %197 = vector.extract_strided_slice %187 {offsets = [0, 32], sizes = [2, 32], strides = [1, 1]} : vector<2x96xf32> to vector<2x32xf32>
    %198 = arith.addf %196, %197 : vector<2x32xf32>
    %199 = arith.negf %198 : vector<2x32xf32>
    %200 = math.exp %199 : vector<2x32xf32>
    %cst_98 = arith.constant 1.000000e+00 : f32
    %201 = vector.broadcast %cst_98 : f32 to vector<2x32xf32>
    %202 = arith.addf %201, %200 : vector<2x32xf32>
    %203 = arith.divf %201, %202 : vector<2x32xf32>
    %204 = vector.extract_strided_slice %184 {offsets = [0, 64], sizes = [2, 32], strides = [1, 1]} : vector<2x96xf32> to vector<2x32xf32>
    %205 = vector.extract_strided_slice %187 {offsets = [0, 64], sizes = [2, 32], strides = [1, 1]} : vector<2x96xf32> to vector<2x32xf32>
    %206 = arith.mulf %195, %205 : vector<2x32xf32>
    %207 = arith.addf %204, %206 : vector<2x32xf32>
    %208 = math.tanh %207 : vector<2x32xf32>
    %cst_99 = arith.constant 1.000000e+00 : f32
    %209 = vector.broadcast %cst_99 : f32 to vector<2x32xf32>
    %210 = arith.subf %209, %203 : vector<2x32xf32>
    %211 = arith.mulf %210, %208 : vector<2x32xf32>
    %212 = arith.mulf %203, %183 : vector<2x32xf32>
    %213 = arith.addf %211, %212 : vector<2x32xf32>
    %214 = vector.extract_strided_slice %118 {offsets = [6, 0], sizes = [2, 96], strides = [1, 1]} : vector<16x96xf32> to vector<2x96xf32>
    %215 = arith.truncf %213 : vector<2x32xf32> to vector<2x32xbf16>
    %cst_100 = arith.constant dense<0.000000e+00> : vector<2x96xf32>
    %216 = tpu.matmul %215, %119, %cst_100 {dimension_numbers = #tpu.dot_dimension_numbers<[1], [0], [0], [1], [0, 0, 1, 1], [], []>} : vector<2x32xbf16>, vector<32x96xbf16>, vector<2x96xf32> -> vector<2x96xf32>
    %217 = arith.addf %216, %122 : vector<2x96xf32>
    %218 = vector.extract_strided_slice %214 {offsets = [0, 0], sizes = [2, 32], strides = [1, 1]} : vector<2x96xf32> to vector<2x32xf32>
    %219 = vector.extract_strided_slice %217 {offsets = [0, 0], sizes = [2, 32], strides = [1, 1]} : vector<2x96xf32> to vector<2x32xf32>
    %220 = arith.addf %218, %219 : vector<2x32xf32>
    %221 = arith.negf %220 : vector<2x32xf32>
    %222 = math.exp %221 : vector<2x32xf32>
    %cst_101 = arith.constant 1.000000e+00 : f32
    %223 = vector.broadcast %cst_101 : f32 to vector<2x32xf32>
    %224 = arith.addf %223, %222 : vector<2x32xf32>
    %225 = arith.divf %223, %224 : vector<2x32xf32>
    %226 = vector.extract_strided_slice %214 {offsets = [0, 32], sizes = [2, 32], strides = [1, 1]} : vector<2x96xf32> to vector<2x32xf32>
    %227 = vector.extract_strided_slice %217 {offsets = [0, 32], sizes = [2, 32], strides = [1, 1]} : vector<2x96xf32> to vector<2x32xf32>
    %228 = arith.addf %226, %227 : vector<2x32xf32>
    %229 = arith.negf %228 : vector<2x32xf32>
    %230 = math.exp %229 : vector<2x32xf32>
    %cst_102 = arith.constant 1.000000e+00 : f32
    %231 = vector.broadcast %cst_102 : f32 to vector<2x32xf32>
    %232 = arith.addf %231, %230 : vector<2x32xf32>
    %233 = arith.divf %231, %232 : vector<2x32xf32>
    %234 = vector.extract_strided_slice %214 {offsets = [0, 64], sizes = [2, 32], strides = [1, 1]} : vector<2x96xf32> to vector<2x32xf32>
    %235 = vector.extract_strided_slice %217 {offsets = [0, 64], sizes = [2, 32], strides = [1, 1]} : vector<2x96xf32> to vector<2x32xf32>
    %236 = arith.mulf %225, %235 : vector<2x32xf32>
    %237 = arith.addf %234, %236 : vector<2x32xf32>
    %238 = math.tanh %237 : vector<2x32xf32>
    %cst_103 = arith.constant 1.000000e+00 : f32
    %239 = vector.broadcast %cst_103 : f32 to vector<2x32xf32>
    %240 = arith.subf %239, %233 : vector<2x32xf32>
    %241 = arith.mulf %240, %238 : vector<2x32xf32>
    %242 = arith.mulf %233, %213 : vector<2x32xf32>
    %243 = arith.addf %241, %242 : vector<2x32xf32>
    %244 = vector.extract_strided_slice %118 {offsets = [8, 0], sizes = [2, 96], strides = [1, 1]} : vector<16x96xf32> to vector<2x96xf32>
    %245 = arith.truncf %243 : vector<2x32xf32> to vector<2x32xbf16>
    %cst_104 = arith.constant dense<0.000000e+00> : vector<2x96xf32>
    %246 = tpu.matmul %245, %119, %cst_104 {dimension_numbers = #tpu.dot_dimension_numbers<[1], [0], [0], [1], [0, 0, 1, 1], [], []>} : vector<2x32xbf16>, vector<32x96xbf16>, vector<2x96xf32> -> vector<2x96xf32>
    %247 = arith.addf %246, %122 : vector<2x96xf32>
    %248 = vector.extract_strided_slice %244 {offsets = [0, 0], sizes = [2, 32], strides = [1, 1]} : vector<2x96xf32> to vector<2x32xf32>
    %249 = vector.extract_strided_slice %247 {offsets = [0, 0], sizes = [2, 32], strides = [1, 1]} : vector<2x96xf32> to vector<2x32xf32>
    %250 = arith.addf %248, %249 : vector<2x32xf32>
    %251 = arith.negf %250 : vector<2x32xf32>
    %252 = math.exp %251 : vector<2x32xf32>
    %cst_105 = arith.constant 1.000000e+00 : f32
    %253 = vector.broadcast %cst_105 : f32 to vector<2x32xf32>
    %254 = arith.addf %253, %252 : vector<2x32xf32>
    %255 = arith.divf %253, %254 : vector<2x32xf32>
    %256 = vector.extract_strided_slice %244 {offsets = [0, 32], sizes = [2, 32], strides = [1, 1]} : vector<2x96xf32> to vector<2x32xf32>
    %257 = vector.extract_strided_slice %247 {offsets = [0, 32], sizes = [2, 32], strides = [1, 1]} : vector<2x96xf32> to vector<2x32xf32>
    %258 = arith.addf %256, %257 : vector<2x32xf32>
    %259 = arith.negf %258 : vector<2x32xf32>
    %260 = math.exp %259 : vector<2x32xf32>
    %cst_106 = arith.constant 1.000000e+00 : f32
    %261 = vector.broadcast %cst_106 : f32 to vector<2x32xf32>
    %262 = arith.addf %261, %260 : vector<2x32xf32>
    %263 = arith.divf %261, %262 : vector<2x32xf32>
    %264 = vector.extract_strided_slice %244 {offsets = [0, 64], sizes = [2, 32], strides = [1, 1]} : vector<2x96xf32> to vector<2x32xf32>
    %265 = vector.extract_strided_slice %247 {offsets = [0, 64], sizes = [2, 32], strides = [1, 1]} : vector<2x96xf32> to vector<2x32xf32>
    %266 = arith.mulf %255, %265 : vector<2x32xf32>
    %267 = arith.addf %264, %266 : vector<2x32xf32>
    %268 = math.tanh %267 : vector<2x32xf32>
    %cst_107 = arith.constant 1.000000e+00 : f32
    %269 = vector.broadcast %cst_107 : f32 to vector<2x32xf32>
    %270 = arith.subf %269, %263 : vector<2x32xf32>
    %271 = arith.mulf %270, %268 : vector<2x32xf32>
    %272 = arith.mulf %263, %243 : vector<2x32xf32>
    %273 = arith.addf %271, %272 : vector<2x32xf32>
    %274 = vector.extract_strided_slice %118 {offsets = [10, 0], sizes = [2, 96], strides = [1, 1]} : vector<16x96xf32> to vector<2x96xf32>
    %275 = arith.truncf %273 : vector<2x32xf32> to vector<2x32xbf16>
    %cst_108 = arith.constant dense<0.000000e+00> : vector<2x96xf32>
    %276 = tpu.matmul %275, %119, %cst_108 {dimension_numbers = #tpu.dot_dimension_numbers<[1], [0], [0], [1], [0, 0, 1, 1], [], []>} : vector<2x32xbf16>, vector<32x96xbf16>, vector<2x96xf32> -> vector<2x96xf32>
    %277 = arith.addf %276, %122 : vector<2x96xf32>
    %278 = vector.extract_strided_slice %274 {offsets = [0, 0], sizes = [2, 32], strides = [1, 1]} : vector<2x96xf32> to vector<2x32xf32>
    %279 = vector.extract_strided_slice %277 {offsets = [0, 0], sizes = [2, 32], strides = [1, 1]} : vector<2x96xf32> to vector<2x32xf32>
    %280 = arith.addf %278, %279 : vector<2x32xf32>
    %281 = arith.negf %280 : vector<2x32xf32>
    %282 = math.exp %281 : vector<2x32xf32>
    %cst_109 = arith.constant 1.000000e+00 : f32
    %283 = vector.broadcast %cst_109 : f32 to vector<2x32xf32>
    %284 = arith.addf %283, %282 : vector<2x32xf32>
    %285 = arith.divf %283, %284 : vector<2x32xf32>
    %286 = vector.extract_strided_slice %274 {offsets = [0, 32], sizes = [2, 32], strides = [1, 1]} : vector<2x96xf32> to vector<2x32xf32>
    %287 = vector.extract_strided_slice %277 {offsets = [0, 32], sizes = [2, 32], strides = [1, 1]} : vector<2x96xf32> to vector<2x32xf32>
    %288 = arith.addf %286, %287 : vector<2x32xf32>
    %289 = arith.negf %288 : vector<2x32xf32>
    %290 = math.exp %289 : vector<2x32xf32>
    %cst_110 = arith.constant 1.000000e+00 : f32
    %291 = vector.broadcast %cst_110 : f32 to vector<2x32xf32>
    %292 = arith.addf %291, %290 : vector<2x32xf32>
    %293 = arith.divf %291, %292 : vector<2x32xf32>
    %294 = vector.extract_strided_slice %274 {offsets = [0, 64], sizes = [2, 32], strides = [1, 1]} : vector<2x96xf32> to vector<2x32xf32>
    %295 = vector.extract_strided_slice %277 {offsets = [0, 64], sizes = [2, 32], strides = [1, 1]} : vector<2x96xf32> to vector<2x32xf32>
    %296 = arith.mulf %285, %295 : vector<2x32xf32>
    %297 = arith.addf %294, %296 : vector<2x32xf32>
    %298 = math.tanh %297 : vector<2x32xf32>
    %cst_111 = arith.constant 1.000000e+00 : f32
    %299 = vector.broadcast %cst_111 : f32 to vector<2x32xf32>
    %300 = arith.subf %299, %293 : vector<2x32xf32>
    %301 = arith.mulf %300, %298 : vector<2x32xf32>
    %302 = arith.mulf %293, %273 : vector<2x32xf32>
    %303 = arith.addf %301, %302 : vector<2x32xf32>
    %304 = vector.extract_strided_slice %118 {offsets = [12, 0], sizes = [2, 96], strides = [1, 1]} : vector<16x96xf32> to vector<2x96xf32>
    %305 = arith.truncf %303 : vector<2x32xf32> to vector<2x32xbf16>
    %cst_112 = arith.constant dense<0.000000e+00> : vector<2x96xf32>
    %306 = tpu.matmul %305, %119, %cst_112 {dimension_numbers = #tpu.dot_dimension_numbers<[1], [0], [0], [1], [0, 0, 1, 1], [], []>} : vector<2x32xbf16>, vector<32x96xbf16>, vector<2x96xf32> -> vector<2x96xf32>
    %307 = arith.addf %306, %122 : vector<2x96xf32>
    %308 = vector.extract_strided_slice %304 {offsets = [0, 0], sizes = [2, 32], strides = [1, 1]} : vector<2x96xf32> to vector<2x32xf32>
    %309 = vector.extract_strided_slice %307 {offsets = [0, 0], sizes = [2, 32], strides = [1, 1]} : vector<2x96xf32> to vector<2x32xf32>
    %310 = arith.addf %308, %309 : vector<2x32xf32>
    %311 = arith.negf %310 : vector<2x32xf32>
    %312 = math.exp %311 : vector<2x32xf32>
    %cst_113 = arith.constant 1.000000e+00 : f32
    %313 = vector.broadcast %cst_113 : f32 to vector<2x32xf32>
    %314 = arith.addf %313, %312 : vector<2x32xf32>
    %315 = arith.divf %313, %314 : vector<2x32xf32>
    %316 = vector.extract_strided_slice %304 {offsets = [0, 32], sizes = [2, 32], strides = [1, 1]} : vector<2x96xf32> to vector<2x32xf32>
    %317 = vector.extract_strided_slice %307 {offsets = [0, 32], sizes = [2, 32], strides = [1, 1]} : vector<2x96xf32> to vector<2x32xf32>
    %318 = arith.addf %316, %317 : vector<2x32xf32>
    %319 = arith.negf %318 : vector<2x32xf32>
    %320 = math.exp %319 : vector<2x32xf32>
    %cst_114 = arith.constant 1.000000e+00 : f32
    %321 = vector.broadcast %cst_114 : f32 to vector<2x32xf32>
    %322 = arith.addf %321, %320 : vector<2x32xf32>
    %323 = arith.divf %321, %322 : vector<2x32xf32>
    %324 = vector.extract_strided_slice %304 {offsets = [0, 64], sizes = [2, 32], strides = [1, 1]} : vector<2x96xf32> to vector<2x32xf32>
    %325 = vector.extract_strided_slice %307 {offsets = [0, 64], sizes = [2, 32], strides = [1, 1]} : vector<2x96xf32> to vector<2x32xf32>
    %326 = arith.mulf %315, %325 : vector<2x32xf32>
    %327 = arith.addf %324, %326 : vector<2x32xf32>
    %328 = math.tanh %327 : vector<2x32xf32>
    %cst_115 = arith.constant 1.000000e+00 : f32
    %329 = vector.broadcast %cst_115 : f32 to vector<2x32xf32>
    %330 = arith.subf %329, %323 : vector<2x32xf32>
    %331 = arith.mulf %330, %328 : vector<2x32xf32>
    %332 = arith.mulf %323, %303 : vector<2x32xf32>
    %333 = arith.addf %331, %332 : vector<2x32xf32>
    %334 = vector.extract_strided_slice %118 {offsets = [14, 0], sizes = [2, 96], strides = [1, 1]} : vector<16x96xf32> to vector<2x96xf32>
    %335 = arith.truncf %333 : vector<2x32xf32> to vector<2x32xbf16>
    %cst_116 = arith.constant dense<0.000000e+00> : vector<2x96xf32>
    %336 = tpu.matmul %335, %119, %cst_116 {dimension_numbers = #tpu.dot_dimension_numbers<[1], [0], [0], [1], [0, 0, 1, 1], [], []>} : vector<2x32xbf16>, vector<32x96xbf16>, vector<2x96xf32> -> vector<2x96xf32>
    %337 = arith.addf %336, %122 : vector<2x96xf32>
    %338 = vector.extract_strided_slice %334 {offsets = [0, 0], sizes = [2, 32], strides = [1, 1]} : vector<2x96xf32> to vector<2x32xf32>
    %339 = vector.extract_strided_slice %337 {offsets = [0, 0], sizes = [2, 32], strides = [1, 1]} : vector<2x96xf32> to vector<2x32xf32>
    %340 = arith.addf %338, %339 : vector<2x32xf32>
    %341 = arith.negf %340 : vector<2x32xf32>
    %342 = math.exp %341 : vector<2x32xf32>
    %cst_117 = arith.constant 1.000000e+00 : f32
    %343 = vector.broadcast %cst_117 : f32 to vector<2x32xf32>
    %344 = arith.addf %343, %342 : vector<2x32xf32>
    %345 = arith.divf %343, %344 : vector<2x32xf32>
    %346 = vector.extract_strided_slice %334 {offsets = [0, 32], sizes = [2, 32], strides = [1, 1]} : vector<2x96xf32> to vector<2x32xf32>
    %347 = vector.extract_strided_slice %337 {offsets = [0, 32], sizes = [2, 32], strides = [1, 1]} : vector<2x96xf32> to vector<2x32xf32>
    %348 = arith.addf %346, %347 : vector<2x32xf32>
    %349 = arith.negf %348 : vector<2x32xf32>
    %350 = math.exp %349 : vector<2x32xf32>
    %cst_118 = arith.constant 1.000000e+00 : f32
    %351 = vector.broadcast %cst_118 : f32 to vector<2x32xf32>
    %352 = arith.addf %351, %350 : vector<2x32xf32>
    %353 = arith.divf %351, %352 : vector<2x32xf32>
    %354 = vector.extract_strided_slice %334 {offsets = [0, 64], sizes = [2, 32], strides = [1, 1]} : vector<2x96xf32> to vector<2x32xf32>
    %355 = vector.extract_strided_slice %337 {offsets = [0, 64], sizes = [2, 32], strides = [1, 1]} : vector<2x96xf32> to vector<2x32xf32>
    %356 = arith.mulf %345, %355 : vector<2x32xf32>
    %357 = arith.addf %354, %356 : vector<2x32xf32>
    %358 = math.tanh %357 : vector<2x32xf32>
    %cst_119 = arith.constant 1.000000e+00 : f32
    %359 = vector.broadcast %cst_119 : f32 to vector<2x32xf32>
    %360 = arith.subf %359, %353 : vector<2x32xf32>
    %361 = arith.mulf %360, %358 : vector<2x32xf32>
    %362 = arith.mulf %353, %333 : vector<2x32xf32>
    %363 = arith.addf %361, %362 : vector<2x32xf32>
    %c0_120 = arith.constant 0 : index
    %c0_121 = arith.constant 0 : index
    %c0_122 = arith.constant 0 : index
    %364 = vector.load %arg2[%c0_120, %c0_121, %c0_122] : memref<2x8x32xf32, #tpu.memory_space<vmem>>, vector<2x8x32xf32>
    %365 = vector.shape_cast %364 : vector<2x8x32xf32> to vector<16x32xf32>
    %366 = arith.truncf %365 : vector<16x32xf32> to vector<16x32xbf16>
    %367 = arith.truncf %363 : vector<2x32xf32> to vector<2x32xbf16>
    %c0_123 = arith.constant 0 : index
    %c0_124 = arith.constant 0 : index
    %368 = vector.load %arg8[%c0_123, %c0_124] : memref<32x32xbf16, #tpu.memory_space<vmem>>, vector<32x32xbf16>
    %cst_125 = arith.constant dense<0.000000e+00> : vector<16x32xf32>
    %369 = tpu.matmul %366, %368, %cst_125 {dimension_numbers = #tpu.dot_dimension_numbers<[1], [0], [0], [1], [0, 0, 1, 1], [], []>} : vector<16x32xbf16>, vector<32x32xbf16>, vector<16x32xf32> -> vector<16x32xf32>
    %cst_126 = arith.constant 0.000000e+00 : f32
    %370 = vector.broadcast %cst_126 : f32 to vector<16x32xf32>
    %371 = arith.maximumf %369, %370 : vector<16x32xf32>
    %372 = vector.shape_cast %371 : vector<16x32xf32> to vector<2x8x32xf32>
    %c0_127 = arith.constant 0 : index
    %c0_128 = arith.constant 0 : index
    %373 = vector.load %arg9[%c0_127, %c0_128] : memref<32x32xbf16, #tpu.memory_space<vmem>>, vector<32x32xbf16>
    %cst_129 = arith.constant dense<0.000000e+00> : vector<2x32xf32>
    %374 = tpu.matmul %367, %373, %cst_129 {dimension_numbers = #tpu.dot_dimension_numbers<[1], [0], [0], [1], [0, 0, 1, 1], [], []>} : vector<2x32xbf16>, vector<32x32xbf16>, vector<2x32xf32> -> vector<2x32xf32>
    %cst_130 = arith.constant 0.000000e+00 : f32
    %375 = vector.broadcast %cst_130 : f32 to vector<2x32xf32>
    %376 = arith.maximumf %374, %375 : vector<2x32xf32>
    %377 = vector.shape_cast %376 : vector<2x32xf32> to vector<2x1x32xf32>
    %378 = vector.broadcast %377 : vector<2x1x32xf32> to vector<2x8x32xf32>
    %379 = arith.mulf %372, %378 : vector<2x8x32xf32>
    %c0_131 = arith.constant 0 : index
    %c0_132 = arith.constant 0 : index
    %380 = vector.load %arg10[%c0_131, %c0_132] : memref<1x32xf32, #tpu.memory_space<vmem>>, vector<1x32xf32>
    %381 = vector.shape_cast %380 : vector<1x32xf32> to vector<1x1x32xf32>
    %382 = vector.broadcast %381 : vector<1x1x32xf32> to vector<2x8x32xf32>
    %383 = arith.mulf %379, %382 : vector<2x8x32xf32>
    %cst_133 = arith.constant dense<0.000000e+00> : vector<2x8xf32>
    %384 = vector.multi_reduction <add>, %383, %cst_133 [2] : vector<2x8x32xf32> to vector<2x8xf32>
    %cst_134 = arith.constant dense<0xFF800000> : vector<2xf32>
    %385 = vector.multi_reduction <maximumf>, %384, %cst_134 [1] : vector<2x8xf32> to vector<2xf32>
    %386 = vector.shape_cast %385 : vector<2xf32> to vector<2x1xf32>
    %387 = vector.broadcast %386 : vector<2x1xf32> to vector<2x8xf32>
    %388 = arith.subf %384, %387 : vector<2x8xf32>
    %389 = math.exp %388 : vector<2x8xf32>
    %cst_135 = arith.constant dense<0.000000e+00> : vector<2xf32>
    %390 = vector.multi_reduction <add>, %389, %cst_135 [1] : vector<2x8xf32> to vector<2xf32>
    %391 = vector.shape_cast %390 : vector<2xf32> to vector<2x1xf32>
    %392 = tpu.reciprocal %391 {approx = true} : vector<2x1xf32> -> vector<2x1xf32>
    %393 = vector.broadcast %392 : vector<2x1xf32> to vector<2x8xf32>
    %394 = arith.mulf %389, %393 : vector<2x8xf32>
    %c0_136 = arith.constant 0 : index
    %c0_137 = arith.constant 0 : index
    %395 = vector.load %arg16[%c0_136, %c0_137] : memref<2x8xf32, #tpu.memory_space<vmem>>, vector<2x8xf32>
    tpu.vector_store %arg16[%c0_136, %c0_137], %394 {strides = array<i32>} : memref<2x8xf32, #tpu.memory_space<vmem>>, vector<2x8xf32>,
    %396 = vector.shape_cast %394 : vector<2x8xf32> to vector<2x8x1xf32>
    %397 = vector.broadcast %396 : vector<2x8x1xf32> to vector<2x8x32xf32>
    %398 = arith.mulf %397, %364 : vector<2x8x32xf32>
    %cst_138 = arith.constant dense<0.000000e+00> : vector<2x32xf32>
    %399 = vector.multi_reduction <add>, %398, %cst_138 [1] : vector<2x8x32xf32> to vector<2x32xf32>
    %c0_139 = arith.constant 0 : index
    %c0_140 = arith.constant 0 : index
    %400 = vector.load %arg11[%c0_139, %c0_140] : memref<32x32xbf16, #tpu.memory_space<vmem>>, vector<32x32xbf16>
    %cst_141 = arith.constant dense<0.000000e+00> : vector<2x32xf32>
    %401 = tpu.matmul %367, %400, %cst_141 {dimension_numbers = #tpu.dot_dimension_numbers<[1], [0], [0], [1], [0, 0, 1, 1], [], []>} : vector<2x32xbf16>, vector<32x32xbf16>, vector<2x32xf32> -> vector<2x32xf32>
    %cst_142 = arith.constant 0.000000e+00 : f32
    %402 = vector.broadcast %cst_142 : f32 to vector<2x32xf32>
    %403 = arith.maximumf %401, %402 : vector<2x32xf32>
    %404 = arith.truncf %399 : vector<2x32xf32> to vector<2x32xbf16>
    %c0_143 = arith.constant 0 : index
    %c0_144 = arith.constant 0 : index
    %405 = vector.load %arg12[%c0_143, %c0_144] : memref<32x32xbf16, #tpu.memory_space<vmem>>, vector<32x32xbf16>
    %cst_145 = arith.constant dense<0.000000e+00> : vector<2x32xf32>
    %406 = tpu.matmul %404, %405, %cst_145 {dimension_numbers = #tpu.dot_dimension_numbers<[1], [0], [0], [1], [0, 0, 1, 1], [], []>} : vector<2x32xbf16>, vector<32x32xbf16>, vector<2x32xf32> -> vector<2x32xf32>
    %cst_146 = arith.constant 0.000000e+00 : f32
    %407 = vector.broadcast %cst_146 : f32 to vector<2x32xf32>
    %408 = arith.maximumf %406, %407 : vector<2x32xf32>
    %409 = arith.mulf %403, %408 : vector<2x32xf32>
    %410 = arith.truncf %409 : vector<2x32xf32> to vector<2x32xbf16>
    %c0_147 = arith.constant 0 : index
    %c0_148 = arith.constant 0 : index
    %411 = vector.load %arg13[%c0_147, %c0_148] : memref<32x10xbf16, #tpu.memory_space<vmem>>, vector<32x10xbf16>
    %cst_149 = arith.constant dense<0.000000e+00> : vector<2x10xf32>
    %412 = tpu.matmul %410, %411, %cst_149 {dimension_numbers = #tpu.dot_dimension_numbers<[1], [0], [0], [1], [0, 0, 1, 1], [], []>} : vector<2x32xbf16>, vector<32x10xbf16>, vector<2x10xf32> -> vector<2x10xf32>
    %c0_150 = arith.constant 0 : index
    %c0_151 = arith.constant 0 : index
    %413 = vector.load %arg14[%c0_150, %c0_151] : memref<1x10xf32, #tpu.memory_space<vmem>>, vector<1x10xf32>
    %414 = vector.broadcast %413 : vector<1x10xf32> to vector<2x10xf32>
    %415 = arith.addf %412, %414 : vector<2x10xf32>
    %c0_152 = arith.constant 0 : index
    %c0_153 = arith.constant 0 : index
    %416 = vector.load %arg15[%c0_152, %c0_153] : memref<2x10xf32, #tpu.memory_space<vmem>>, vector<2x10xf32>
    tpu.vector_store %arg15[%c0_152, %c0_153], %415 {strides = array<i32>} : memref<2x10xf32, #tpu.memory_space<vmem>>, vector<2x10xf32>,
    return
  }
  func.func @transform_0(%arg0: i32, %arg1: memref<8x2xi32, #tpu.memory_space<smem>>) -> (i32, i32, i32) {
    %c0_i32 = arith.constant 0 : i32
    %c0_i32_0 = arith.constant 0 : i32
    %c0_i32_1 = arith.constant 0 : i32
    return %arg0, %c0_i32, %c0_i32_0 : i32, i32, i32
  }
  func.func @transform_1(%arg0: i32, %arg1: memref<8x2xi32, #tpu.memory_space<smem>>) -> (i32, i32) {
    %c0_i32 = arith.constant 0 : i32
    %c0_i32_0 = arith.constant 0 : i32
    %c0_i32_1 = arith.constant 0 : i32
    return %c0_i32, %c0_i32_0 : i32, i32
  }
  func.func @transform_2(%arg0: i32, %arg1: memref<8x2xi32, #tpu.memory_space<smem>>) -> (i32, i32) {
    %c0_i32 = arith.constant 0 : i32
    %c0_i32_0 = arith.constant 0 : i32
    %c0_i32_1 = arith.constant 0 : i32
    return %c0_i32, %c0_i32_0 : i32, i32
  }
  func.func @transform_3(%arg0: i32, %arg1: memref<8x2xi32, #tpu.memory_space<smem>>) -> (i32, i32) {
    %c0_i32 = arith.constant 0 : i32
    %c0_i32_0 = arith.constant 0 : i32
    %c0_i32_1 = arith.constant 0 : i32
    return %c0_i32, %c0_i32_0 : i32, i32
  }
  func.func @transform_4(%arg0: i32, %arg1: memref<8x2xi32, #tpu.memory_space<smem>>) -> (i32, i32) {
    %c0_i32 = arith.constant 0 : i32
    %c0_i32_0 = arith.constant 0 : i32
    %c0_i32_1 = arith.constant 0 : i32
    return %c0_i32, %c0_i32_0 : i32, i32
  }
  func.func @transform_5(%arg0: i32, %arg1: memref<8x2xi32, #tpu.memory_space<smem>>) -> (i32, i32) {
    %c0_i32 = arith.constant 0 : i32
    %c0_i32_0 = arith.constant 0 : i32
    %c0_i32_1 = arith.constant 0 : i32
    return %c0_i32, %c0_i32_0 : i32, i32
  }
  func.func @transform_6(%arg0: i32, %arg1: memref<8x2xi32, #tpu.memory_space<smem>>) -> (i32, i32) {
    %c0_i32 = arith.constant 0 : i32
    %c0_i32_0 = arith.constant 0 : i32
    %c0_i32_1 = arith.constant 0 : i32
    return %c0_i32, %c0_i32_0 : i32, i32
  }
  func.func @transform_7(%arg0: i32, %arg1: memref<8x2xi32, #tpu.memory_space<smem>>) -> (i32, i32) {
    %c0_i32 = arith.constant 0 : i32
    %c0_i32_0 = arith.constant 0 : i32
    %c0_i32_1 = arith.constant 0 : i32
    return %c0_i32, %c0_i32_0 : i32, i32
  }
  func.func @transform_8(%arg0: i32, %arg1: memref<8x2xi32, #tpu.memory_space<smem>>) -> (i32, i32) {
    %c0_i32 = arith.constant 0 : i32
    %c0_i32_0 = arith.constant 0 : i32
    %c0_i32_1 = arith.constant 0 : i32
    return %c0_i32, %c0_i32_0 : i32, i32
  }
  func.func @transform_9(%arg0: i32, %arg1: memref<8x2xi32, #tpu.memory_space<smem>>) -> (i32, i32) {
    %c0_i32 = arith.constant 0 : i32
    %c0_i32_0 = arith.constant 0 : i32
    %c0_i32_1 = arith.constant 0 : i32
    return %c0_i32, %c0_i32_0 : i32, i32
  }
  func.func @transform_10(%arg0: i32, %arg1: memref<8x2xi32, #tpu.memory_space<smem>>) -> (i32, i32) {
    %c0_i32 = arith.constant 0 : i32
    %c0_i32_0 = arith.constant 0 : i32
    %c0_i32_1 = arith.constant 0 : i32
    return %c0_i32, %c0_i32_0 : i32, i32
  }
  func.func @transform_11(%arg0: i32, %arg1: memref<8x2xi32, #tpu.memory_space<smem>>) -> (i32, i32) {
    %c0_i32 = arith.constant 0 : i32
    %c0_i32_0 = arith.constant 0 : i32
    %c0_i32_1 = arith.constant 0 : i32
    return %c0_i32, %c0_i32_0 : i32, i32
  }
  func.func @transform_12(%arg0: i32, %arg1: memref<8x2xi32, #tpu.memory_space<smem>>) -> (i32, i32) {
    %c0_i32 = arith.constant 0 : i32
    %c0_i32_0 = arith.constant 0 : i32
    %c0_i32_1 = arith.constant 0 : i32
    return %c0_i32, %c0_i32_0 : i32, i32
  }
  func.func @transform_13(%arg0: i32, %arg1: memref<8x2xi32, #tpu.memory_space<smem>>) -> (i32, i32) {
    %c0_i32 = arith.constant 0 : i32
    %c0_i32_0 = arith.constant 0 : i32
    return %arg0, %c0_i32 : i32, i32
  }
  func.func @transform_14(%arg0: i32, %arg1: memref<8x2xi32, #tpu.memory_space<smem>>) -> (i32, i32) {
    %c0_i32 = arith.constant 0 : i32
    %c0_i32_0 = arith.constant 0 : i32
    return %arg0, %c0_i32 : i32, i32
  }
}

</mosaic_0001>

<bundles_post_ra>
// kernel: tpu_custom_call.1
= control target key start
LH: loop header
LB: loop body
LE: loop exit
PB: predicated region body
PF: predicated region fallthrough
CT: control target
= control target key end

     0   :  { %s2198_s0 = inlined_call_operand.vmem [shape: s32[8,2], index: 0, kind: input, shape index: {}]   ;;  %s2199_s1 = inlined_call_operand.vmem [shape: f32[2,8,32], index: 1, kind: input, shape index: {}]   ;;  %s2200_s2 = inlined_call_operand.vmem [shape: f32[50,32], index: 2, kind: input, shape index: {}]   ;;  %s2201_s3 = inlined_call_operand.vmem [shape: bf16[32,96], index: 3, kind: input, shape index: {}]   ;;  %s2202_s4 = inlined_call_operand.vmem [shape: bf16[32,96], index: 4, kind: input, shape index: {}]   ;;  %s2203_s5 = inlined_call_operand.vmem [shape: f32[1,96], index: 5, kind: input, shape index: {}]   ;;  %s2204_s6 = inlined_call_operand.vmem [shape: f32[1,96], index: 6, kind: input, shape index: {}]   ;;  %s2205_s7 = inlined_call_operand.vmem [shape: bf16[32,32], index: 7, kind: input, shape index: {}]   ;;  %s2206_s8 = inlined_call_operand.vmem [shape: bf16[32,32], index: 8, kind: input, shape index: {}]   ;;  %s2207_s9 = inlined_call_operand.vmem [shape: f32[1,32], index: 9, kind: input, shape index: {}]   ;;  %s2208_s10 = inlined_call_operand.vmem [shape: bf16[32,32], index: 10, kind: input, shape index: {}]   ;;  %s2209_s11 = inlined_call_operand.hbm [shape: bf16[32,32], index: 11, kind: input, shape index: {}]   ;;  %s2210_s12 = inlined_call_operand.vmem [shape: bf16[32,10], index: 12, kind: input, shape index: {}]   ;;  %s2211_s13 = inlined_call_operand.vmem [shape: f32[1,10], index: 13, kind: input, shape index: {}]   ;;  %s2212_s14 = inlined_call_operand.hbm [shape: f32[2,10], index: 14, kind: output, shape index: {0}]   ;;  %s2213_s15 = inlined_call_operand.hbm [shape: f32[2,8], index: 15, kind: output, shape index: {1}]  }
   0x1   :  { %2216 = sst [smem:[#allocation15_spill]] %s2212_s14  ;;  %s21_s20 = sshll.u32 %s2198_s0, 4  ;;  %s22_s20 = int_to_ptr.vmem [resolvable:$true] %s21_s20 }
   0x2   :  { %s1716_s21 = scalar_lea.vmem %s22_s20, 128  ;;  %p1721_p1 = scmp.lt.s32.totalorder %s22_s20, %s22_s20 }
   0x3   :  { %p1717_p0 = scmp.ne.s32.totalorder %s22_s20, %s1716_s21  ;;  %p1722_p2 = scmp.lt.s32.totalorder %s1716_s21, %s1716_s21 }
   0x5   :  { %p1723_p3 = por %p1722_p2, %p1721_p1 }
   0x7   :  { %p1724_p4 = pnand %p1723_p3, %p1717_p0 }
   0x9   :  { %1727 = shalt.err (!%p1724_p4)  }
   0xa   :  { %s1796_s22 = smov [#allocation4]  }
   0xb   :  { %24 = dma.vmem_to_smem %s22_s20, 128, %s1796_s22, [#allocation3] }
   0xc   :  { %1788 = dma.done.wait [#allocation3], 128 }
   0xd   :  { %1789 = vsyncadd [#allocation3], 4294967168 }
   0xe   :  { %26 = sfence }
   0xf   :  { %27 = vsyncpa [#allocation6], 0 }
  0x10   :  { %28 = vsyncpa [#allocation7], 0 }
  0x11   :  { %29 = vsyncpa [#allocation10], 0  ;;  %s1797_s23 = smov [#allocation5]  }
  0x12   :  { %s55_s24 = sshll.u32 %s1797_s23, 4  ;;  %s56_s24 = int_to_ptr.vmem [resolvable:$true] %s55_s24 }
  0x13   :  { %s1736_s0 = scalar_lea.vmem %s56_s24, 256  ;;  %p1741_p6 = scmp.lt.s32.totalorder %s56_s24, %s56_s24 }
  0x14   :  { %p1737_p5 = scmp.ne.s32.totalorder %s56_s24, %s1736_s0  ;;  %p1742_p7 = scmp.lt.s32.totalorder %s1736_s0, %s1736_s0 }
  0x16   :  { %p1743_p8 = por %p1742_p7, %p1741_p6 }
  0x18   :  { %p1744_p9 = pnand %p1743_p8, %p1737_p5 }
  0x1a   :  { %1747 = shalt.err (!%p1744_p9)
}
  0x1b   :  { %s2214_s25 = smov 64   ;;  %s1799_s26 = smov 4  }
  0x1c   :  { %61 = dma.hbm_to_vmem [thread:$0]  %s2209_s11, 256, %s56_s24, [#allocation6], %s2214_s25, %s2214_s25, %s1799_s26  }
  0x1d   :  { %1790 = dma.done.wait [#allocation6], 256  }
  0x1e   :  { %1791 = vsyncadd [#allocation6], 4294967040  ;;  %v1800_v0 = vmov 0.0   ;;  %s71_s29 = sld [smem:[#allocation4]]  ;;  %vm1801_vm0 = vmmov 0   ;;  %v1802_v1 = vmov 0  }
  0x1f   :  { %1531 = vmatprep.subr.bf16.mxu1 %v1800_v0  ;;  %1523 = vmatprep.subr.bf16.mxu0 %v1800_v0  ;;  %s1427_s30 = sld [smem:[#allocation4 + $0x1]]  ;;  %v1904_v2 = vld [vmem:[%s2202_s4 + $0x8] sm:$0xff]   ;;  %v1919_v4 = vld [vmem:[%s2202_s4] sm:$0xff]   ;;  %vm74_vm1 = vcmask 253952   ;;  %vm213_vm2 = vcmask 261120   ;;  %vm1091_vm3 = vcmask 1041409  }
  0x20   :  { %1535 = vmatprep.mubr.msk.bf16.mxu1 %vm1801_vm0, %v1800_v0  ;;  %1527 = vmatprep.mubr.msk.bf16.mxu0 %vm1801_vm0, %v1800_v0  ;;  %s1428_s16 = sld [smem:[#allocation4 + $0x80]]  ;;  %v1649_v3 = vld [vmem:[%s2201_s3 + $0x8] sm:$0xff]   ;;  %v1651_v5 = vld [vmem:[%s2201_s3] sm:$0xff]   ;;  %vm1094_vm4 = vcmask 58368  }
  0x21   :  { %1647 = vset.pattern.permute.xlu1 %v1802_v1  ;;  %1646 = vset.pattern.permute.xlu0 %v1802_v1  ;;  %s1429_s11 = sld [smem:[#allocation4 + $0x81]]  ;;  %v2003_v25 = vld [vmem:[%s2204_s6] ss:$0 sm:$0xff] }
  0x22   :  { %s1430_s17 = sld [smem:[#allocation4 + $0x100]]  ;;  %1532 = vmatpush3.bf16.msra.mxu1 %v1904_v2  ;;  %1524 = vmatpush3.bf16.msra.mxu0 %v1649_v3  ;;  %v1442_v33 = vld [vmem:[%s2203_s5] ss:$0 sm:$0xff]  ;;  %s1803_s5 = smov 96  }
  0x23   :  { %s1431_s18 = sld [smem:[#allocation4 + $0x101]]  ;;  %1533 = vmatprep.subr.bf16.mxu1 %v1800_v0  ;;  %1525 = vmatprep.subr.bf16.mxu0 %v1800_v0 }
  0x24   :  { %s72_s0 = scalar_lea.vmem %s2200_s2, %s71_s29  ;;  %s1432_s26 = sld [smem:[#allocation4 + $0x180]] }
  0x25   :  { %s78_s28 = scalar_lea.vmem %s2200_s2, %s1427_s30  ;;  %v73_v6 = vld [vmem:[%s72_s0] sm:$0x1]  ;;  %s1434_s0 = sld [smem:[#allocation4 + $0x200]] }
  0x26   :  { %s89_s21 = scalar_lea.vmem %s2200_s2, %s1428_s16  ;;  %v79_v7 = vld [vmem:[%s78_s28] sm:$0x1]  ;;  %75 = vst.msk [vmem:[#allocation2] sm:$0x1] %vm74_vm1, %v73_v6  ;;  %1534 = vmatpush3.bf16.msra.mxu1 %v1919_v4  ;;  %1526 = vmatpush3.bf16.msra.mxu0 %v1651_v5  ;;  %s1435_s27 = sld [smem:[#allocation4 + $0x201]] }
  0x27   :  { %s100_s24 = scalar_lea.vmem %s2200_s2, %s1429_s11  ;;  %v90_v8 = vld [vmem:[%s89_s21] sm:$0x1]  ;;  %80 = vst.msk [vmem:[#allocation2 + $0x1] sm:$0x1] %vm74_vm1, %v79_v7  ;;  %1547 = vmatprep.subr.bf16.mxu1 %v1800_v0  ;;  %1539 = vmatprep.subr.bf16.mxu0 %v1800_v0  ;;  %s1437_s28 = sld [smem:[#allocation4 + $0x281]] }
  0x28   :  { %s107_s25 = scalar_lea.vmem %s2200_s2, %s1430_s17  ;;  %91 = vst.msk [vmem:[#allocation2 + $0x2] sm:$0x1] %vm74_vm1, %v90_v8  ;;  %v101_v9 = vld [vmem:[%s100_s24] sm:$0x1]  ;;  %s1433_s17 = sld [smem:[#allocation4 + $0x181]] }
  0x29   :  { %v108_v10 = vld [vmem:[%s107_s25] sm:$0x1]  ;;  %s114_s11 = scalar_lea.vmem %s2200_s2, %s1431_s18  ;;  %102 = vst.msk [vmem:[#allocation2 + $0x3] sm:$0x1] %vm74_vm1, %v101_v9  ;;  %1536 = vmatmul.mubr.bf16.vlgmr.msra.gmra.mxu1 %v1802_v1  ;;  %s1436_s18 = sld [smem:[#allocation4 + $0x280]] }
  0x2a   :  { %109 = vst.msk [vmem:[#allocation2 + $0x4] sm:$0x1] %vm74_vm1, %v108_v10  ;;  %v115_v11 = vld [vmem:[%s114_s11] sm:$0x1]  ;;  %1548 = vmatpush3.bf16.msra.mxu1 %v1904_v2  ;;  %1551 = vmatprep.mubr.msk.bf16.mxu1 %vm1801_vm0, %v1800_v0  ;;  %s121_s21 = scalar_lea.vmem %s2200_s2, %s1432_s26  ;;  %s1438_s29 = sld [smem:[#allocation4 + $0x300]] }
  0x2b   :  { %116 = vst.msk [vmem:[#allocation2 + $0x5] sm:$0x1] %vm74_vm1, %v115_v11  ;;  %1549 = vmatprep.subr.bf16.mxu1 %v1800_v0  ;;  %v122_v12 = vld [vmem:[%s121_s21] sm:$0x1]  ;;  %s1439_s24 = sld [smem:[#allocation4 + $0x301]]  ;;  %s135_s25 = scalar_lea.vmem %s2200_s2, %s1434_s0 }
  0x2c   :  { %123 = vst.msk [vmem:[#allocation2 + $0x6] sm:$0x1] %vm74_vm1, %v122_v12  ;;  %s1440_s3 = sld [smem:[#allocation4 + $0x380]]  ;;  %v136_v14 = vld [vmem:[%s135_s25] sm:$0x1]  ;;  %s142_s26 = scalar_lea.vmem %s2200_s2, %s1435_s27 }
  0x2d   :  { %s1441_s19 = sld [smem:[#allocation4 + $0x381]]  ;;  %137 = vst.msk [vmem:[#allocation2 + $0x8] sm:$0x1] %vm74_vm1, %v136_v14  ;;  %v143_v15 = vld [vmem:[%s142_s26] sm:$0x1]  ;;  %s156_s30 = scalar_lea.vmem %s2200_s2, %s1437_s28 }
  0x2e   :  { %s128_s23 = scalar_lea.vmem %s2200_s2, %s1433_s17  ;;  %1550 = vmatpush3.bf16.msra.mxu1 %v1919_v4  ;;  %144 = vst.msk [vmem:[#allocation2 + $0x9] sm:$0x1] %vm74_vm1, %v143_v15  ;;  %v157_v17 = vld [vmem:[%s156_s30] sm:$0x1] }
  0x2f   :  { %v129_v13 = vld [vmem:[%s128_s23] sm:$0x1]  ;;  %s149_s21 = scalar_lea.vmem %s2200_s2, %s1436_s18  ;;  %1563 = vmatprep.subr.bf16.mxu1 %v1800_v0  ;;  %158 = vst.msk [vmem:[#allocation2 + $0xb] sm:$0x1] %vm74_vm1, %v157_v17 }
  0x30   :  { %130 = vst.msk [vmem:[#allocation2 + $0x7] sm:$0x1] %vm74_vm1, %v129_v13  ;;  %v150_v16 = vld [vmem:[%s149_s21] sm:$0x1]  ;;  %s163_s4 = scalar_lea.vmem %s2200_s2, %s1438_s29 }
  0x31   :  { %151 = vst.msk [vmem:[#allocation2 + $0xa] sm:$0x1] %vm74_vm1, %v150_v16  ;;  %v164_v18 = vld [vmem:[%s163_s4] sm:$0x1]  ;;  %s170_s25 = scalar_lea.vmem %s2200_s2, %s1439_s24 }
  0x32   :  { %165 = vst.msk [vmem:[#allocation2 + $0xc] sm:$0x1] %vm74_vm1, %v164_v18  ;;  %v171_v19 = vld [vmem:[%s170_s25] sm:$0x1]  ;;  %s177_s28 = scalar_lea.vmem %s2200_s2, %s1440_s3  ;;  %s2217_s3 = smov 64  }
  0x33   :  { %172 = vst.msk [vmem:[#allocation2 + $0xd] sm:$0x1] %vm74_vm1, %v171_v19  ;;  %v178_v20 = vld [vmem:[%s177_s28] sm:$0x1]  ;;  %s184_s29 = scalar_lea.vmem %s2200_s2, %s1441_s19  ;;  %s1805_s2 = smov [#allocation9]  }
  0x34   :  { %179 = vst.msk [vmem:[#allocation2 + $0xe] sm:$0x1] %vm74_vm1, %v178_v20  ;;  %v185_v21 = vld [vmem:[%s184_s29] sm:$0x1]  ;;  %s1398_s24 = sshll.u32 %s1805_s2, 4  ;;  %s1399_s24 = int_to_ptr.vmem [resolvable:$true] %s1398_s24 }
  0x35   :  { %186 = vst.msk [vmem:[#allocation2 + $0xf] sm:$0x1] %vm74_vm1, %v185_v21  ;;  %p1753_p11 = scmp.lt.s32.totalorder %s1399_s24, %s1399_s24 }
  0x37   :  { %v187_v22 = vld [vmem:[#allocation2] sm:$0xff] }
  0x3c   :  { %v188_v23 = vld [vmem:[#allocation2 + $0x8] sm:$0xff] }
  0x3d   :  { %v189_v24 = vpack.c.bf16 %v188_v23, %v187_v22 }
  0x3f   :  { %1528 = vmatmul.mubr.msk.bf16.vlgmr.msra.gmra.mxu0 %vm213_vm2, %v189_v24 }
  0x40   :  { %1540 = vmatpush3.bf16.msra.mxu0 %v1904_v2  ;;  %1543 = vmatprep.mubr.msk.bf16.mxu0 %vm1801_vm0, %v1800_v0 }
  0x41   :  { %1541 = vmatprep.subr.bf16.mxu0 %v1800_v0 }
  0x44   :  { %1542 = vmatpush3.bf16.msra.mxu0 %v1919_v4 }
  0x45   :  { %1555 = vmatprep.subr.bf16.mxu0 %v1800_v0 }
  0xe9   :  { %v318_v26 = vpop.f32.mrf.mxu1 }
  0xea   :  { %v319_v27 = vadd.f32 %v2003_v25, %v318_v26 }
  0xeb   :  { %v1537_v28 = vpop.f32.mrf.mxu1 }
  0xec   :  { %332 = vrot.lane.b32.xlu0 %v319_v27, %s2217_s3 }
  0xed   :  { %v321_v29 = vpop.f32.mrf.mxu1 }
  0xef   :  { %v1538_v30 = vpop.f32.mrf.mxu1 }
  0xff   :  { %v251_v31 = vpop.f32.mrf.mxu0 }
 0x100   :  { %v2012_v37 = vadd.f32 %v1442_v33, %v251_v31 }
 0x101   :  { %v1529_v32 = vpop.f32.mrf.mxu0 }
 0x102   :  { %v324_v38 = vadd.f32 %v319_v27, %v2012_v37 }
 0x103   :  { %v254_v34 = vpop.f32.mrf.mxu0 }
 0x104   :  { %v2010_v35 = vadd.f32 %v1442_v33, %v254_v34  ;;  %v1449_v39 = vmul.f32 -1.442695, %v324_v38 }
 0x105   :  { %v1530_v36 = vpop.f32.mrf.mxu0 }
 0x106   :  { %1662 = vpow2.f32 %v1449_v39 }
 0x113   :  { %v1663_v40 = vpop.eup %1662 }
 0x114   :  { %v328_v41 = vadd.f32 1.0, %v1663_v40 }
 0x116   :  { %1664 = vrcp.f32 %v328_v41 }
 0x123   :  { %v1665_v42 = vpop.eup %1664 }
 0x124   :  { %v342_v48 = vsub.f32 1.0, %v1665_v42  ;;  %v348_v50 = vmul.f32 0.0, %v1665_v42 }
 0x15e   :  { %v333_v43 = vpop.permute.xlu0 %332 }
 0x15f   :  { %v335_v44 = vmul.f32 %v1665_v42, %v333_v43 }
 0x161   :  { %337 = vrot.lane.b32.xlu0 %v335_v44, %s2217_s3 }
 0x1d3   :  { %v338_v45 = vpop.permute.xlu0 %337 }
 0x1d4   :  { %v340_v46 = vadd.f32 %v338_v45, %v2012_v37 }
 0x1d6   :  { %1666 = vtanh.f32 %v340_v46 }
 0x1e3   :  { %v1667_v47 = vpop.eup %1666 }
 0x1e4   :  { %344 = vrot.lane.b32.xlu1 %v1667_v47, %s1803_s5 }
 0x256   :  { %v345_v49 = vpop.permute.xlu1 %344 }
 0x257   :  { %v347_v51 = vmul.f32 %v345_v49, %v342_v48 }
 0x259   :  { %v349_v52 = vadd.f32 %v348_v50, %v347_v51 }
 0x25b   :  { %v350_v53 = vpack.c.bf16 %v349_v52, %v349_v52  ;;  %v424_v10 = vrot.slane %v349_v52, 6 }
 0x25d   :  { %352 = vrot.lane.b32.xlu1 %v350_v53, %s1803_s5 }
 0x2cf   :  { %v353_v54 = vpop.permute.xlu1 %352 }
 0x2d0   :  { %1544 = vmatmul.mubr.msk.bf16.vlgmr.msra.gmra.mxu0 %vm213_vm2, %v353_v54 }
 0x2d1   :  { %1556 = vmatpush3.bf16.msra.mxu0 %v1904_v2  ;;  %1559 = vmatprep.mubr.msk.bf16.mxu0 %vm1801_vm0, %v1800_v0 }
 0x2d2   :  { %1557 = vmatprep.subr.bf16.mxu0 %v1800_v0 }
 0x2d5   :  { %1558 = vmatpush3.bf16.msra.mxu0 %v1919_v4 }
 0x2d6   :  { %1571 = vmatprep.subr.bf16.mxu0 %v1800_v0 }
 0x390   :  { %v391_v55 = vpop.f32.mrf.mxu0 }
 0x391   :  { %v392_v56 = vadd.f32 %v2003_v25, %v391_v55 }
 0x392   :  { %v1545_v57 = vpop.f32.mrf.mxu0 }
 0x393   :  { %v398_v58 = vrot.slane %v392_v56, 6 }
 0x394   :  { %v394_v59 = vpop.f32.mrf.mxu0 }
 0x395   :  { %407 = vrot.lane.b32.xlu0 %v398_v58, %s2217_s3  ;;  %v400_v61 = vadd.f32 %v398_v58, %v2012_v37 }
 0x396   :  { %v1546_v60 = vpop.f32.mrf.mxu0 }
 0x397   :  { %v1451_v62 = vmul.f32 -1.442695, %v400_v61 }
 0x399   :  { %1668 = vpow2.f32 %v1451_v62 }
 0x3a6   :  { %v1669_v63 = vpop.eup %1668 }
 0x3a7   :  { %v404_v1 = vadd.f32 1.0, %v1669_v63 }
 0x3a9   :  { %1670 = vrcp.f32 %v404_v1 }
 0x3b6   :  { %v1671_v3 = vpop.eup %1670 }
 0x3b7   :  { %v417_v11 = vsub.f32 1.0, %v1671_v3  ;;  %v426_v13 = vmul.f32 %v1671_v3, %v424_v10 }
 0x407   :  { %v408_v5 = vpop.permute.xlu0 %407 }
 0x408   :  { %v410_v6 = vmul.f32 %v1671_v3, %v408_v5 }
 0x40a   :  { %412 = vrot.lane.b32.xlu1 %v410_v6, %s2217_s3 }
 0x47c   :  { %v413_v7 = vpop.permute.xlu1 %412 }
 0x47d   :  { %v415_v8 = vadd.f32 %v413_v7, %v2012_v37 }
 0x47f   :  { %1672 = vtanh.f32 %v415_v8 }
 0x48c   :  { %v1673_v9 = vpop.eup %1672 }
 0x48d   :  { %419 = vrot.lane.b32.xlu0 %v1673_v9, %s1803_s5 }
 0x4ff   :  { %v420_v12 = vpop.permute.xlu0 %419 }
 0x500   :  { %v422_v14 = vmul.f32 %v420_v12, %v417_v11 }
 0x502   :  { %v427_v15 = vadd.f32 %v426_v13, %v422_v14 }
 0x504   :  { %v428_v16 = vpack.c.bf16 %v427_v15, %v427_v15  ;;  %v503_v38 = vrot.slane %v427_v15, 6 }
 0x506   :  { %v430_v17 = vrot.slane %v428_v16, 1 }
 0x508   :  { %431 = vrot.lane.b32.xlu1 %v430_v17, %s1803_s5 }
 0x57a   :  { %v432_v18 = vpop.permute.xlu1 %431 }
 0x57b   :  { %1552 = vmatmul.mubr.msk.bf16.vlgmr.msra.gmra.mxu1 %vm213_vm2, %v432_v18 }
 0x57c   :  { %1564 = vmatpush3.bf16.msra.mxu1 %v1904_v2  ;;  %1567 = vmatprep.mubr.msk.bf16.mxu1 %vm1801_vm0, %v1800_v0 }
 0x57d   :  { %1565 = vmatprep.subr.bf16.mxu1 %v1800_v0 }
 0x580   :  { %1566 = vmatpush3.bf16.msra.mxu1 %v1919_v4 }
 0x581   :  { %1579 = vmatprep.subr.bf16.mxu1 %v1800_v0 }
 0x63b   :  { %v470_v19 = vpop.f32.mrf.mxu1 }
 0x63c   :  { %v471_v20 = vadd.f32 %v2003_v25, %v470_v19 }
 0x63d   :  { %v1553_v21 = vpop.f32.mrf.mxu1 }
 0x63e   :  { %v477_v22 = vrot.slane %v471_v20, 4 }
 0x63f   :  { %v473_v23 = vpop.f32.mrf.mxu1 }
 0x640   :  { %486 = vrot.lane.b32.xlu0 %v477_v22, %s2217_s3  ;;  %v479_v26 = vadd.f32 %v477_v22, %v2012_v37 }
 0x641   :  { %v1554_v24 = vpop.f32.mrf.mxu1 }
 0x642   :  { %v1453_v27 = vmul.f32 -1.442695, %v479_v26 }
 0x644   :  { %1674 = vpow2.f32 %v1453_v27 }
 0x651   :  { %v1675_v28 = vpop.eup %1674 }
 0x652   :  { %v483_v29 = vadd.f32 1.0, %v1675_v28 }
 0x654   :  { %1676 = vrcp.f32 %v483_v29 }
 0x661   :  { %v1677_v30 = vpop.eup %1676 }
 0x662   :  { %v496_v39 = vsub.f32 1.0, %v1677_v30  ;;  %v505_v41 = vmul.f32 %v1677_v30, %v503_v38 }
 0x6b2   :  { %v487_v31 = vpop.permute.xlu0 %486 }
 0x6b3   :  { %v489_v32 = vmul.f32 %v1677_v30, %v487_v31 }
 0x6b5   :  { %491 = vrot.lane.b32.xlu1 %v489_v32, %s2217_s3 }
 0x727   :  { %v492_v33 = vpop.permute.xlu1 %491 }
 0x728   :  { %v494_v34 = vadd.f32 %v492_v33, %v2012_v37 }
 0x72a   :  { %1678 = vtanh.f32 %v494_v34 }
 0x737   :  { %v1679_v36 = vpop.eup %1678 }
 0x738   :  { %498 = vrot.lane.b32.xlu0 %v1679_v36, %s1803_s5 }
 0x7aa   :  { %v499_v40 = vpop.permute.xlu0 %498 }
 0x7ab   :  { %v501_v42 = vmul.f32 %v499_v40, %v496_v39 }
 0x7ad   :  { %v506_v43 = vadd.f32 %v505_v41, %v501_v42 }
 0x7af   :  { %v507_v44 = vpack.c.bf16 %v506_v43, %v506_v43  ;;  %v582_v63 = vrot.slane %v506_v43, 6 }
 0x7b1   :  { %v509_v45 = vrot.slane %v507_v44, 2 }
 0x7b3   :  { %510 = vrot.lane.b32.xlu1 %v509_v45, %s1803_s5 }
 0x825   :  { %v511_v46 = vpop.permute.xlu1 %510 }
 0x826   :  { %1560 = vmatmul.mubr.msk.bf16.vlgmr.msra.gmra.mxu0 %vm213_vm2, %v511_v46 }
 0x827   :  { %1572 = vmatpush3.bf16.msra.mxu0 %v1904_v2  ;;  %1575 = vmatprep.mubr.msk.bf16.mxu0 %vm1801_vm0, %v1800_v0 }
 0x828   :  { %1573 = vmatprep.subr.bf16.mxu0 %v1800_v0 }
 0x82b   :  { %1574 = vmatpush3.bf16.msra.mxu0 %v1919_v4 }
 0x82c   :  { %1587 = vmatprep.subr.bf16.mxu0 %v1800_v0 }
 0x8e6   :  { %v549_v47 = vpop.f32.mrf.mxu0 }
 0x8e7   :  { %v550_v48 = vadd.f32 %v2003_v25, %v549_v47 }
 0x8e8   :  { %v1561_v49 = vpop.f32.mrf.mxu0 }
 0x8e9   :  { %v556_v50 = vrot.slane %v550_v48, 2 }
 0x8ea   :  { %v552_v51 = vpop.f32.mrf.mxu0 }
 0x8eb   :  { %565 = vrot.lane.b32.xlu0 %v556_v50, %s2217_s3  ;;  %v558_v53 = vadd.f32 %v556_v50, %v2012_v37 }
 0x8ec   :  { %v1562_v52 = vpop.f32.mrf.mxu0 }
 0x8ed   :  { %v1455_v54 = vmul.f32 -1.442695, %v558_v53 }
 0x8ef   :  { %1680 = vpow2.f32 %v1455_v54 }
 0x8fc   :  { %v1681_v55 = vpop.eup %1680 }
 0x8fd   :  { %v562_v56 = vadd.f32 1.0, %v1681_v55 }
 0x8ff   :  { %1682 = vrcp.f32 %v562_v56 }
 0x90c   :  { %v1683_v57 = vpop.eup %1682 }
 0x90d   :  { %v575_v1 = vsub.f32 1.0, %v1683_v57  ;;  %v584_v5 = vmul.f32 %v1683_v57, %v582_v63 }
 0x95d   :  { %v566_v58 = vpop.permute.xlu0 %565 }
 0x95e   :  { %v568_v59 = vmul.f32 %v1683_v57, %v566_v58 }
 0x960   :  { %570 = vrot.lane.b32.xlu1 %v568_v59, %s2217_s3 }
 0x9d2   :  { %v571_v60 = vpop.permute.xlu1 %570 }
 0x9d3   :  { %v573_v61 = vadd.f32 %v571_v60, %v2012_v37 }
 0x9d5   :  { %1684 = vtanh.f32 %v573_v61 }
 0x9e2   :  { %v1685_v62 = vpop.eup %1684 }
 0x9e3   :  { %577 = vrot.lane.b32.xlu0 %v1685_v62, %s1803_s5 }
 0xa55   :  { %v578_v3 = vpop.permute.xlu0 %577 }
 0xa56   :  { %v580_v6 = vmul.f32 %v578_v3, %v575_v1 }
 0xa58   :  { %v585_v7 = vadd.f32 %v584_v5, %v580_v6 }
 0xa5a   :  { %v586_v8 = vpack.c.bf16 %v585_v7, %v585_v7  ;;  %v659_v26 = vrot.slane %v585_v7, 6 }
 0xa5c   :  { %v588_v9 = vrot.slane %v586_v8, 3 }
 0xa5e   :  { %589 = vrot.lane.b32.xlu1 %v588_v9, %s1803_s5 }
 0xad0   :  { %v590_v10 = vpop.permute.xlu1 %589 }
 0xad1   :  { %1568 = vmatmul.mubr.msk.bf16.vlgmr.msra.gmra.mxu1 %vm213_vm2, %v590_v10 }
 0xad2   :  { %1580 = vmatpush3.bf16.msra.mxu1 %v1904_v2  ;;  %1583 = vmatprep.mubr.msk.bf16.mxu1 %vm1801_vm0, %v1800_v0 }
 0xad3   :  { %1581 = vmatprep.subr.bf16.mxu1 %v1800_v0 }
 0xad6   :  { %1582 = vmatpush3.bf16.msra.mxu1 %v1919_v4 }
 0xad7   :  { %1595 = vmatprep.subr.bf16.mxu1 %v1800_v0 }
 0xb91   :  { %v628_v37 = vpop.f32.mrf.mxu1 }
 0xb92   :  { %v629_v11 = vadd.f32 %v2003_v25, %v628_v37 }
 0xb93   :  { %v1569_v12 = vpop.f32.mrf.mxu1 }
 0xb94   :  { %642 = vrot.lane.b32.xlu0 %v629_v11, %s2217_s3  ;;  %v634_v15 = vadd.f32 %v629_v11, %v2010_v35 }
 0xb95   :  { %v631_v13 = vpop.f32.mrf.mxu1 }
 0xb96   :  { %v1457_v16 = vmul.f32 -1.442695, %v634_v15 }
 0xb97   :  { %v1570_v14 = vpop.f32.mrf.mxu1 }
 0xb98   :  { %1686 = vpow2.f32 %v1457_v16 }
 0xba5   :  { %v1687_v17 = vpop.eup %1686 }
 0xba6   :  { %v638_v18 = vadd.f32 1.0, %v1687_v17 }
 0xba8   :  { %1688 = vrcp.f32 %v638_v18 }
 0xbb5   :  { %v1689_v19 = vpop.eup %1688 }
 0xbb6   :  { %v652_v27 = vsub.f32 1.0, %v1689_v19  ;;  %v661_v29 = vmul.f32 %v1689_v19, %v659_v26 }
 0xc06   :  { %v643_v20 = vpop.permute.xlu0 %642 }
 0xc07   :  { %v645_v21 = vmul.f32 %v1689_v19, %v643_v20 }
 0xc09   :  { %647 = vrot.lane.b32.xlu1 %v645_v21, %s2217_s3 }
 0xc7b   :  { %v648_v22 = vpop.permute.xlu1 %647 }
 0xc7c   :  { %v650_v23 = vadd.f32 %v648_v22, %v2010_v35 }
 0xc7e   :  { %1690 = vtanh.f32 %v650_v23 }
 0xc8b   :  { %v1691_v24 = vpop.eup %1690 }
 0xc8c   :  { %654 = vrot.lane.b32.xlu0 %v1691_v24, %s1803_s5 }
 0xcfe   :  { %v655_v28 = vpop.permute.xlu0 %654 }
 0xcff   :  { %v657_v30 = vmul.f32 %v655_v28, %v652_v27 }
 0xd01   :  { %v662_v31 = vadd.f32 %v661_v29, %v657_v30 }
 0xd03   :  { %v663_v32 = vpack.c.bf16 %v662_v31, %v662_v31  ;;  %v737_v50 = vrot.slane %v662_v31, 6 }
 0xd05   :  { %665 = vrot.lane.b32.xlu1 %v663_v32, %s1803_s5 }
 0xd77   :  { %v666_v33 = vpop.permute.xlu1 %665 }
 0xd78   :  { %1576 = vmatmul.mubr.msk.bf16.vlgmr.msra.gmra.mxu0 %vm213_vm2, %v666_v33 }
 0xd79   :  { %1588 = vmatpush3.bf16.msra.mxu0 %v1904_v2  ;;  %1591 = vmatprep.mubr.msk.bf16.mxu0 %vm1801_vm0, %v1800_v0 }
 0xd7a   :  { %1589 = vmatprep.subr.bf16.mxu0 %v1800_v0 }
 0xd7d   :  { %1590 = vmatpush3.bf16.msra.mxu0 %v1919_v4 }
 0xd7e   :  { %1603 = vmatprep.subr.bf16.mxu0 %v1800_v0 }
 0xe38   :  { %v704_v34 = vpop.f32.mrf.mxu0 }
 0xe39   :  { %v705_v36 = vadd.f32 %v2003_v25, %v704_v34 }
 0xe3a   :  { %v1577_v38 = vpop.f32.mrf.mxu0 }
 0xe3b   :  { %v711_v39 = vrot.slane %v705_v36, 6 }
 0xe3c   :  { %v707_v40 = vpop.f32.mrf.mxu0 }
 0xe3d   :  { %720 = vrot.lane.b32.xlu0 %v711_v39, %s2217_s3  ;;  %v713_v2 = vadd.f32 %v711_v39, %v2010_v35  ;;  %v1652_v39 = vld [vmem:[%s2205_s7 + $0x8] sm:$0xff]  }
 0xe3e   :  { %v1578_v41 = vpop.f32.mrf.mxu0  ;;  %v1654_v40 = vld [vmem:[%s2206_s8 + $0x8] sm:$0xff]  }
 0xe3f   :  { %v1459_v42 = vmul.f32 -1.442695, %v713_v2  ;;  %v1653_v41 = vld [vmem:[%s2205_s7] sm:$0xff]  }
 0xe40   :  { %v2119_v2 = vld [vmem:[%s2199_s1] sm:$0xff] }
 0xe41   :  { %1692 = vpow2.f32 %v1459_v42  ;;  %v1656_v42 = vld [vmem:[%s2206_s8] sm:$0xff]  }
 0xe4e   :  { %v1693_v43 = vpop.eup %1692 }
 0xe4f   :  { %v717_v44 = vadd.f32 1.0, %v1693_v43 }
 0xe51   :  { %1694 = vrcp.f32 %v717_v44 }
 0xe5e   :  { %v1695_v45 = vpop.eup %1694 }
 0xe5f   :  { %v730_v51 = vsub.f32 1.0, %v1695_v45  ;;  %v739_v53 = vmul.f32 %v1695_v45, %v737_v50 }
 0xeaf   :  { %v721_v4 = vpop.permute.xlu0 %720 }
 0xeb0   :  { %v723_v46 = vmul.f32 %v1695_v45, %v721_v4  ;;  %v1655_v45 = vld [vmem:[%s2208_s10 + $0x8] sm:$0xff]   ;;  %v1657_v4 = vld [vmem:[%s2208_s10] sm:$0xff]  }
 0xeb2   :  { %725 = vrot.lane.b32.xlu1 %v723_v46, %s2217_s3 }
 0xf24   :  { %v726_v47 = vpop.permute.xlu1 %725 }
 0xf25   :  { %v728_v48 = vadd.f32 %v726_v47, %v2010_v35 }
 0xf27   :  { %1696 = vtanh.f32 %v728_v48 }
 0xf34   :  { %v1697_v49 = vpop.eup %1696 }
 0xf35   :  { %732 = vrot.lane.b32.xlu0 %v1697_v49, %s1803_s5 }
 0xfa7   :  { %v733_v52 = vpop.permute.xlu0 %732 }
 0xfa8   :  { %v735_v54 = vmul.f32 %v733_v52, %v730_v51 }
 0xfaa   :  { %v740_v55 = vadd.f32 %v739_v53, %v735_v54 }
 0xfac   :  { %v741_v56 = vpack.c.bf16 %v740_v55, %v740_v55  ;;  %v816_v13 = vrot.slane %v740_v55, 6 }
 0xfae   :  { %v743_v57 = vrot.slane %v741_v56, 1 }
 0xfb0   :  { %744 = vrot.lane.b32.xlu1 %v743_v57, %s1803_s5 }
0x1022   :  { %v745_v58 = vpop.permute.xlu1 %744 }
0x1023   :  { %1584 = vmatmul.mubr.msk.bf16.vlgmr.msra.gmra.mxu1 %vm213_vm2, %v745_v58 }
0x1024   :  { %1599 = vmatprep.mubr.msk.bf16.mxu1 %vm1801_vm0, %v1800_v0  ;;  %1596 = vmatpush3.bf16.msra.mxu1 %v1652_v39 }
0x1025   :  { %1597 = vmatprep.subr.bf16.mxu1 %v1800_v0 }
0x1028   :  { %1598 = vmatpush3.bf16.msra.mxu1 %v1653_v41 }
0x1029   :  { %1611 = vmatprep.subr.bf16.mxu1 %v1800_v0 }
0x10e3   :  { %v783_v59 = vpop.f32.mrf.mxu1 }
0x10e4   :  { %v784_v60 = vadd.f32 %v2003_v25, %v783_v59  ;;  %v1804_v59 = vmov 1966171168  }
0x10e5   :  { %v1585_v61 = vpop.f32.mrf.mxu1 }
0x10e6   :  { %v790_v62 = vrot.slane %v784_v60, 4  ;;  %v1031_v60 = vunpack.c.l.s4 %v1804_v59  ;;  %v1033_v61 = vlaneseq  ;;  %v1658_v59 = vld [vmem:[#allocation5 + $0x8] sm:$0xff]  }
0x10e7   :  { %v786_v63 = vpop.f32.mrf.mxu1 }
0x10e8   :  { %799 = vrot.lane.b32.xlu0 %v790_v62, %s2217_s3  ;;  %v792_v3 = vadd.f32 %v790_v62, %v2010_v35  ;;  %v1032_v62 = vunpack.c.0.s8 %v1031_v60  ;;  %v2154_v63 = vshrl.u32 %v1033_v61, 7  ;;  %v1659_v60 = vld [vmem:[#allocation5] sm:$0xff]  }
0x10e9   :  { %v1586_v1 = vpop.f32.mrf.mxu1 }
0x10ea   :  { %v1461_v5 = vmul.f32 -1.442695, %v792_v3  ;;  %v1035_v1 = vsub.s32 %v1032_v62, %v2154_v63 }
0x10ec   :  { %1698 = vpow2.f32 %v1461_v5 }
0x10f9   :  { %v1699_v6 = vpop.eup %1698 }
0x10fa   :  { %v796_v7 = vadd.f32 1.0, %v1699_v6 }
0x10fc   :  { %1700 = vrcp.f32 %v796_v7 }
0x1109   :  { %v1701_v8 = vpop.eup %1700 }
0x110a   :  { %v809_v14 = vsub.f32 1.0, %v1701_v8  ;;  %v818_v16 = vmul.f32 %v1701_v8, %v816_v13 }
0x115a   :  { %v800_v9 = vpop.permute.xlu0 %799 }
0x115b   :  { %v802_v10 = vmul.f32 %v1701_v8, %v800_v9 }
0x115d   :  { %804 = vrot.lane.b32.xlu1 %v802_v10, %s2217_s3  ;;  %v1054_v10 = vsub.s32 0, %v2154_v63 }
0x11cf   :  { %v805_v37 = vpop.permute.xlu1 %804 }
0x11d0   :  { %v807_v11 = vadd.f32 %v805_v37, %v2010_v35 }
0x11d2   :  { %1702 = vtanh.f32 %v807_v11 }
0x11df   :  { %v1703_v12 = vpop.eup %1702 }
0x11e0   :  { %811 = vrot.lane.b32.xlu0 %v1703_v12, %s1803_s5 }
0x1252   :  { %v812_v15 = vpop.permute.xlu0 %811 }
0x1253   :  { %v814_v17 = vmul.f32 %v812_v15, %v809_v14 }
0x1255   :  { %v819_v18 = vadd.f32 %v818_v16, %v814_v17 }
0x1257   :  { %v820_v19 = vpack.c.bf16 %v819_v18, %v819_v18  ;;  %v895_v46 = vrot.slane %v819_v18, 6 }
0x1259   :  { %v822_v20 = vrot.slane %v820_v19, 2  ;;  %v1470_v19 = vld [vmem:[%s2207_s9] ss:$0 sm:$0xff] }
0x125b   :  { %823 = vrot.lane.b32.xlu1 %v822_v20, %s1803_s5 }
0x12cd   :  { %v824_v21 = vpop.permute.xlu1 %823 }
0x12ce   :  { %1592 = vmatmul.mubr.msk.bf16.vlgmr.msra.gmra.mxu0 %vm213_vm2, %v824_v21 }
0x12cf   :  { %1607 = vmatprep.mubr.msk.bf16.mxu0 %vm1801_vm0, %v1800_v0  ;;  %1604 = vmatpush3.bf16.msra.mxu0 %v1654_v40 }
0x12d0   :  { %1605 = vmatprep.subr.bf16.mxu0 %v1800_v0 }
0x12d3   :  { %1606 = vmatpush3.bf16.msra.mxu0 %v1656_v42 }
0x12d4   :  { %1619 = vmatprep.subr.bf16.mxu0 %v1800_v0 }
0x138e   :  { %v862_v22 = vpop.f32.mrf.mxu0 }
0x138f   :  { %v863_v23 = vadd.f32 %v2003_v25, %v862_v22 }
0x1390   :  { %v1593_v24 = vpop.f32.mrf.mxu0 }
0x1391   :  { %v869_v26 = vrot.slane %v863_v23, 2 }
0x1392   :  { %v865_v27 = vpop.f32.mrf.mxu0 }
0x1393   :  { %878 = vrot.lane.b32.xlu0 %v869_v26, %s2217_s3  ;;  %v871_v29 = vadd.f32 %v869_v26, %v2010_v35 }
0x1394   :  { %v1594_v28 = vpop.f32.mrf.mxu0 }
0x1395   :  { %v1463_v30 = vmul.f32 -1.442695, %v871_v29  ;;  %v1082_v29 = vand.u32 127, %v1033_v61  ;;  %v1660_v61 = vld [vmem:[%s2210_s12 + $0x8] sm:$0xff]  }
0x1397   :  { %1704 = vpow2.f32 %v1463_v30  ;;  %v1085_v30 = vsub.s32 %v1082_v29, %v2154_v63 }
0x13a4   :  { %v1705_v31 = vpop.eup %1704 }
0x13a5   :  { %v875_v32 = vadd.f32 1.0, %v1705_v31 }
0x13a7   :  { %1706 = vrcp.f32 %v875_v32 }
0x13b4   :  { %v1707_v33 = vpop.eup %1706 }
0x13b5   :  { %v888_v47 = vsub.f32 1.0, %v1707_v33  ;;  %v897_v49 = vmul.f32 %v1707_v33, %v895_v46 }
0x1405   :  { %v879_v34 = vpop.permute.xlu0 %878 }
0x1406   :  { %v881_v36 = vmul.f32 %v1707_v33, %v879_v34 }
0x1408   :  { %883 = vrot.lane.b32.xlu1 %v881_v36, %s2217_s3  ;;  %s1748_s3 = scalar_lea.vmem %s1399_s24, 32 }
0x1409   :  { %p1749_p10 = scmp.ne.s32.totalorder %s1399_s24, %s1748_s3  ;;  %p1754_p12 = scmp.lt.s32.totalorder %s1748_s3, %s1748_s3 }
0x140b   :  { %p1755_p13 = por %p1754_p12, %p1753_p11 }
0x140d   :  { %p1756_p0 = pnand %p1755_p13, %p1749_p10 }
0x147a   :  { %v884_v38 = vpop.permute.xlu1 %883 }
0x147b   :  { %v886_v25 = vadd.f32 %v884_v38, %v2010_v35  ;;  %v2124_v35 = vld [vmem:[%s2199_s1 + $0x8] sm:$0xff] }
0x147c   :  { %v901_v44 = vpack.c.bf16 %v2124_v35, %v2119_v2 }
0x147d   :  { %1708 = vtanh.f32 %v886_v25  ;;  %v1105_v25 = vsub.s32 1, %v2154_v63 }
0x147e   :  { %1600 = vmatmul.mubr.msk.bf16.vlgmr.msra.gmra.mxu1 %vm213_vm2, %v901_v44 }
0x147f   :  { %1612 = vmatpush3.bf16.msra.mxu1 %v1655_v45  ;;  %1615 = vmatprep.mubr.msk.bf16.mxu1 %vm1801_vm0, %v1800_v0 }
0x1480   :  { %1613 = vmatprep.subr.bf16.mxu1 %v1800_v0 }
0x1483   :  { %1614 = vmatpush3.bf16.msra.mxu1 %v1657_v4 }
0x1484   :  { %1627 = vmatprep.subr.bf16.mxu1 %v1800_v0 }
0x148a   :  { %v1709_v43 = vpop.eup %1708 }
0x148b   :  { %890 = vrot.lane.b32.xlu0 %v1709_v43, %s1803_s5 }
0x14fd   :  { %v891_v48 = vpop.permute.xlu0 %890 }
0x14fe   :  { %v893_v50 = vmul.f32 %v891_v48, %v888_v47 }
0x1500   :  { %v898_v51 = vadd.f32 %v897_v49, %v893_v50 }
0x1502   :  { %v902_v52 = vpack.c.bf16 %v898_v51, %v898_v51 }
0x1504   :  { %v970_v53 = vrot.slane %v902_v52, 3 }
0x1506   :  { %971 = vrot.lane.b32.xlu1 %v970_v53, %s1803_s5 }
0x153e   :  { %v956_v54 = vpop.f32.mrf.mxu1 }
0x153f   :  { %v963_v16 = vmax.f32 %v956_v54, 0.0 }
0x1540   :  { %v1601_v55 = vpop.f32.mrf.mxu1 }
0x1542   :  { %v959_v56 = vpop.f32.mrf.mxu1 }
0x1543   :  { %v964_v20 = vmax.f32 %v959_v56, 0.0 }
0x1544   :  { %v1602_v57 = vpop.f32.mrf.mxu1 }
0x1578   :  { %v972_v58 = vpop.permute.xlu1 %971 }
0x1579   :  { %1608 = vmatmul.mubr.msk.bf16.vlgmr.msra.gmra.mxu0 %vm213_vm2, %v972_v58  ;;  %1616 = vmatmul.mubr.msk.bf16.vlgmr.msra.gmra.mxu1 %vm213_vm2, %v972_v58 }
0x157a   :  { %1623 = vmatprep.mubr.msk.bf16.mxu0 %vm1801_vm0, %v1800_v0  ;;  %1631 = vmatprep.mubr.msk.bf16.mxu1 %vm1801_vm0, %v1800_v0 }
0x157b   :  { %1620 = vmatpush3.bf16.msra.mxu0 %v1658_v59  ;;  %1628 = vmatpush3.bf16.msra.mxu1 %v1660_v61 }
0x157c   :  { %1621 = vmatprep.subr.bf16.mxu0 %v1800_v0  ;;  %1629 = vmatprep.subr.bf16.mxu1 %v1800_v0 }
0x157f   :  { %1622 = vmatpush3.bf16.msra.mxu0 %v1659_v60 }
0x1639   :  { %v1022_v3 = vpop.f32.mrf.mxu0  ;;  %v2157_v5 = vpop.f32.mrf.mxu1 }
0x163a   :  { %v1028_v6 = vmax.f32 %v1022_v3, 0.0 }
0x163b   :  { %v1609_v7 = vpop.f32.mrf.mxu0  ;;  %v1617_v8 = vpop.f32.mrf.mxu1 }
0x163c   :  { %v1036_v9 = vrot.slane %v1028_v6, %v1035_v1 }
0x163d   :  { %v1025_v37 = vpop.f32.mrf.mxu0  ;;  %v1240_v11 = vpop.f32.mrf.mxu1 }
0x163e   :  { %v1037_v12 = vcombine.high %v1036_v9, %v1036_v9  ;;  %v1044_v13 = vrot.slane %v1036_v9, %v1035_v1 }
0x163f   :  { %v1610_v14 = vpop.f32.mrf.mxu0  ;;  %v1618_v15 = vpop.f32.mrf.mxu1 }
0x1640   :  { %v1051_v17 = vrot.slane %v1037_v12, %v1035_v1  ;;  %v1055_v18 = vrot.slane %v1044_v13, %v1054_v10 }
0x1642   :  { %v1062_v21 = vmul.f32 %v1055_v18, %v963_v16  ;;  %v1059_v22 = vrot.slane %v1051_v17, %v1054_v10 }
0x1644   :  { %v1071_v23 = vmul.f32 %v1470_v19, %v1062_v21  ;;  %v1063_v24 = vmul.f32 %v1059_v22, %v964_v20 }
0x1646   :  { %v1073_v26 = vsel %vm213_vm2, %v1071_v23, 0.0  ;;  %v1072_v27 = vmul.f32 %v1470_v19, %v1063_v24 }
0x1647   :  { %1074 = vadd.xlane.f32.xlu0 %v1073_v26  ;;  %v1661_v26 = vld [vmem:[%s2210_s12] sm:$0xff]  }
0x1648   :  { %v1076_v28 = vsel %vm213_vm2, %v1072_v27, 0.0  ;;  %1630 = vmatpush3.bf16.msra.mxu1 %v1661_v26 }
0x1649   :  { %1077 = vadd.xlane.f32.xlu1 %v1076_v28  ;;  %v1243_v28 = vmax.f32 %v2157_v5, 0.0 }
0x16d0   :  { %v1075_v31 = vpop.xlane.xlu0 %1074 }
0x16d1   :  { %v1086_v33 = vrot.slane %v1075_v31, %v1085_v30 }
0x16d2   :  { %v1078_v32 = vpop.xlane.xlu1 %1077 }
0x16d3   :  { %v1090_v34 = vrot.slane %v1078_v32, %v1085_v30 }
0x16d5   :  { %v1092_v36 = vsel %vm1091_vm3, %v1090_v34, %v1086_v33 }
0x16d6   :  { %v1095_v38 = vsel %vm1094_vm4, %v1092_v36, -inf }
0x16d7   :  { %1096 = vmax.xlane.f32.xlu0 %v1095_v38 }
0x1760   :  { %v1097_v39 = vpop.xlane.xlu0 %1096 }
0x1761   :  { %v1102_v40 = vrot.slane %v1097_v39, %v1054_v10  ;;  %v1106_v41 = vrot.slane %v1097_v39, %v1105_v25 }
0x1763   :  { %v1109_v42 = vsub.f32 %v1075_v31, %v1102_v40  ;;  %v1110_v43 = vsub.f32 %v1078_v32, %v1106_v41 }
0x1765   :  { %v1111_v44 = vmul.f32 1.442695, %v1109_v42  ;;  %v1113_v45 = vmul.f32 1.442695, %v1110_v43 }
0x1767   :  { %1710 = vpow2.f32 %v1111_v44 }
0x1768   :  { %1712 = vpow2.f32 %v1113_v45 }
0x1774   :  { %v1711_v4 = vpop.eup %1710 }
0x1775   :  { %v1713_v46 = vpop.eup %1712  ;;  %1118 = vperm.xlu0 %1646, %v1711_v4  }
0x1776   :  { %1121 = vperm.xlu1 %1647, %v1713_v46  }
0x17f0   :  { %v1119_v47 = vpop.permute.xlu0 %1118 }
0x17f1   :  { %v1122_v48 = vpop.permute.xlu1 %1121  ;;  %v1126_v49 = vrot.slane %v1119_v47, %v1085_v30 }
0x17f2   :  { %v1130_v50 = vrot.slane %v1122_v48, %v1085_v30 }
0x17f4   :  { %v1131_v51 = vsel %vm1091_vm3, %v1130_v50, %v1126_v49 }
0x17f5   :  { %v1133_v52 = vsel %vm1094_vm4, %v1131_v51, 0.0 }
0x17f6   :  { %1134 = vadd.xlane.f32.xlu1 %v1133_v52 }
0x187f   :  { %v1135_v53 = vpop.xlane.xlu1 %1134 }
0x1880   :  { %1714 = vrcp.f32 %v1135_v53 }
0x188d   :  { %v1715_v54 = vpop.eup %1714 }
0x188e   :  { %v1141_v55 = vrot.slane %v1715_v54, %v1054_v10  ;;  %v1145_v57 = vrot.slane %v1715_v54, %v1105_v25 }
0x1890   :  { %v1148_v56 = vmul.f32 %v1711_v4, %v1141_v55  ;;  %v1149_v58 = vmul.f32 %v1713_v46, %v1145_v57 }
0x1892   :  { %1153 = vperm.xlu0 %1646, %v1148_v56  }
0x1896   :  { %1156 = vperm.xlu0 %1646, %v1149_v58  }
0x190d   :  { %v1154_v62 = vpop.permute.xlu0 %1153 }
0x190e   :  { %v1171_v63 = vmul.f32 %v1154_v62, %v2119_v2  ;;  %v1161_v7 = vrot.slane %v1154_v62, %v1085_v30 }
0x1910   :  { %v1173_v1 = vsel %vm213_vm2, %v1171_v63, 0.0 }
0x1911   :  { %v1174_v3 = vrot.slane %v1173_v1, 4  ;;  %v1157_v6 = vpop.permute.xlu0 %1156 }
0x1912   :  { %v1165_v8 = vrot.slane %v1157_v6, %v1085_v30  ;;  %v1172_v9 = vmul.f32 %v1157_v6, %v2124_v35 }
0x1913   :  { %v1175_v10 = vadd.f32 %v1174_v3, %v1173_v1 }
0x1914   :  { %v1180_v37 = vsel %vm213_vm2, %v1172_v9, 0.0  ;;  %v1166_v11 = vsel %vm1091_vm3, %v1165_v8, %v1161_v7 }
0x1915   :  { %v1176_v12 = vrot.slane %v1175_v10, 2  ;;  %v1181_v13 = vrot.slane %v1180_v37, 4  ;;  %1168 = vst.msk [vmem:[#allocation9] sm:$0x3] %vm1094_vm4, %v1166_v11 }
0x1917   :  { %v1177_v0 = vadd.f32 %v1176_v12, %v1175_v10  ;;  %v1182_v14 = vadd.f32 %v1181_v13, %v1180_v37 }
0x1919   :  { %v1178_v2 = vrot.slane %v1177_v0, 1  ;;  %v1183_v15 = vrot.slane %v1182_v14, 2 }
0x191b   :  { %v1179_v16 = vadd.f32 %v1178_v2, %v1177_v0  ;;  %v1184_v17 = vadd.f32 %v1183_v15, %v1182_v14 }
0x191d   :  { %v1185_v18 = vrot.slane %v1184_v17, 1  ;;  %v1244_v19 = vpack.c.bf16 %v1179_v16, %v1179_v16 }
0x191f   :  { %v1186_v20 = vadd.f32 %v1185_v18, %v1184_v17  ;;  %v1252_v35 = vunpack.c.l.b16 %v1244_v19 }
0x1921   :  { %v1245_v21 = vpack.c.bf16 %v1186_v20, %v1186_v20 }
0x1923   :  { %v1253_v22 = vunpack.c.l.b16 %v1245_v21 }
0x1925   :  { %v1254_v23 = vsel %vm1091_vm3, %v1253_v22, %v1252_v35 }
0x1926   :  { %v1255_v24 = vpack.c.b16 %v1254_v23, %v1254_v23 }
0x1928   :  { %1624 = vmatmul.mubr.msk.bf16.vlgmr.msra.gmra.mxu0 %vm213_vm2, %v1255_v24 }
0x19e8   :  { %v1305_v27 = vpop.f32.mrf.mxu0 }
0x19e9   :  { %v1311_v29 = vmax.f32 %v1305_v27, 0.0 }
0x19ea   :  { %v1625_v30 = vpop.f32.mrf.mxu0 }
0x19eb   :  { %v1312_v31 = vmul.f32 %v1311_v29, %v1243_v28 }
0x19ec   :  { %v1308_v32 = vpop.f32.mrf.mxu0 }
0x19ed   :  { %v1313_v33 = vpack.c.bf16 %v1312_v31, %v1312_v31 }
0x19ee   :  { %v1626_v34 = vpop.f32.mrf.mxu0 }
0x19ef   :  { %1632 = vmatmul.mubr.msk.bf16.vlgmr.msra.gmra.mxu1 %vm213_vm2, %v1313_v33 }
0x19f0   :  { %1759 = shalt.err (!%p1756_p0)
}
0x19f1   :  { %1401 = dma.vmem_to_hbm [thread:$0]  %s1399_s24, 32, %s2213_s15, [#allocation10]   ;;  %v1477_v5 = vld [vmem:[%s2211_s13] ss:$0 sm:$0xff]  ;;  %vm1380_vm5 = vcmask 74752  }
0x19f2   :  { %s1806_s6 = smov [#allocation8]  }
0x19f3   :  { %s1388_s21 = sshll.u32 %s1806_s6, 4  ;;  %s1389_s21 = int_to_ptr.vmem [resolvable:$true] %s1388_s21 }
0x19f4   :  { %s1768_s0 = scalar_lea.vmem %s1389_s21, 32  ;;  %p1773_p2 = scmp.lt.s32.totalorder %s1389_s21, %s1389_s21 }
0x19f5   :  { %p1769_p1 = scmp.ne.s32.totalorder %s1389_s21, %s1768_s0  ;;  %p1774_p3 = scmp.lt.s32.totalorder %s1768_s0, %s1768_s0 }
0x19f7   :  { %p1775_p4 = por %p1774_p3, %p1773_p2 }
0x19f9   :  { %p1776_p5 = pnand %p1775_p4, %p1769_p1 }
0x1aaf   :  { %v1374_v36 = vpop.f32.mrf.mxu1 }
0x1ab0   :  { %v1375_v38 = vadd.f32 %v1477_v5, %v1374_v36 }
0x1ab1   :  { %v1633_v25 = vpop.f32.mrf.mxu1 }
0x1ab2   :  { %1381 = vst.msk [vmem:[#allocation8] sm:$0x3] %vm1380_vm5, %v1375_v38 }
0x1ab3   :  { %v1377_v39 = vpop.f32.mrf.mxu1 }
0x1ab4   :  { %1779 = shalt.err (!%p1776_p5)
}
0x1ab5   :  { %s2218_s30 = sld [smem:[#allocation15_spill]]  ;;  %v1634_v40 = vpop.f32.mrf.mxu1 }
0x1abb   :  { %1391 = dma.vmem_to_hbm [thread:$0]  %s1389_s21, 32, %s2218_s30, [#allocation7]  }
0x1abc   :  { %1792 = dma.done.wait [#allocation7], 32  }
0x1abd   :  { %1793 = vsyncadd [#allocation7], 4294967264 }
0x1abe   :  { %1794 = dma.done.wait [#allocation10], 32  }
0x1abf   :  { %1795 = vsyncadd [#allocation10], 4294967264 }
0x1ac0   :  { %1408 = vsyncpa [#allocation6], 1 }
0x1ac1   :  { %1409 = vsyncpa [#allocation7], 1 }
0x1ac2   :  { %1410 = vsyncpa [#allocation10], 1 }

</bundles_post_ra>
